<compile_context>
chip_gen: v6e
topology: v6e:2x2x1
jax: 0.10.0
libtpu: 0.0.40
codegen_flags: <defaults>
</compile_context>

<pallas_src>
import functools

import jax
import jax.numpy as jnp
from jax import lax
from jax.experimental import pallas as pl
from jax.experimental.pallas import tpu as pltpu

_BN_EPS = 1e-5
_VMEM_LIMIT_BYTES = 32 * 1024 * 1024
# TODO(synk): at realistic volumes (e.g. 64^3 x 32ch) tile the D axis with a
# 1-voxel halo (manual DMA, memory_space=pl.ANY), mark (batch, D-tile) grid axes
# "parallel", consider pl.Buffered(3) on the activation input, and set
# per-generation VMEM budgets (<= ~48 MiB on v7x, ~96 MiB on v5e/v6e).  The toy
# shapes here fit whole-volume blocks, so grid=(N,) is sufficient.
# TODO(synk): storing the intermediate y in bf16 would halve its HBM traffic but
# adds ~1e-3 relative error vs an f32-BN reference; kept f32 to hold the 1e-3
# validation tolerance.


def _cparams():
    # grid=(N,) carries no cross-step accumulator (BN stats are per-block
    # partials reduced later), so the batch axis can be "parallel" (both
    # TensorCores on v7x / megacore parts).
    return pltpu.CompilerParams(
        dimension_semantics=("parallel",),
        vmem_limit_bytes=_VMEM_LIMIT_BYTES,
    )


# ------------------------------ kernel bodies ------------------------------ #

def _fold_w(rows, W, C):
    # (k, W*C) -> (k, C): sum the W channel groups (static lane slices + adds;
    # avoids a lane->sublane reshape of the reduced row).
    out = rows[:, 0:C]
    for w in range(1, W):
        out = out + rows[:, w * C:(w + 1) * C]
    return out


def _conv_band_stats(src_ref, band_ref, y_ref, stats_ref, *, D, H, W, Cin, Cout):
    """3x3x3 conv from a (1, D+2, H+2, W*Cin) bf16 zero-halo'd source + BN stats.

    band_ref: (9, W*Cin, W*Cout) bf16 kw-folded banded weights.  Nine
    accumulating matmuls (one per (kd, kh)); the f32 accumulator comes out
    directly in the packed (W*Cout) lane layout, so no per-tap relayouts.
    """
    acc = jnp.zeros((D * H, W * Cout), jnp.float32)
    for kd in range(3):
        for kh in range(3):
            slab = src_ref[0, pl.ds(kd, D), pl.ds(kh, H), :].reshape(D * H, W * Cin)
            acc = acc + jnp.dot(slab, band_ref[kd * 3 + kh],
                                preferred_element_type=jnp.float32)
    # Per-channel BatchNorm partial statistics from the f32 accumulator while it
    # is still in VMEM (no extra HBM pass over y).
    s1 = jnp.sum(acc, axis=0, keepdims=True)            # (1, W*Cout)
    s2 = jnp.sum(acc * acc, axis=0, keepdims=True)      # (1, W*Cout)
    s = _fold_w(jnp.concatenate([s1, s2], axis=0), W, Cout)   # (2, Cout)
    stats_ref[...] = s.reshape(1, 2, Cout)
    y_ref[...] = acc.reshape(1, D, H, W * Cout).astype(y_ref.dtype)


def _bn_scale_shift(stats_ref, g_ref, b_ref, *, count, eps, W, C):
    # Finalize BN(train) statistics (tiny: 2*C values) and broadcast the
    # per-channel affine into the packed (W*C) lane layout.
    # TODO(synk): var via E[x^2]-E[x]^2 can lose precision for large means at
    # scale; a centered second pass would need an extra pass over y.
    s = jnp.sum(stats_ref[...], axis=0)                               # (2, C)
    mean = s[0:1, :] * (1.0 / count)
    var = jnp.maximum(s[1:2, :] * (1.0 / count) - mean * mean, 0.0)   # biased var
    inv = lax.rsqrt(var + eps)
    scale = g_ref[...] * inv                                          # (1, C)
    shift = b_ref[...] - mean * scale                                 # (1, C)
    scale_w = jnp.broadcast_to(scale.reshape(1, 1, C), (1, W, C)).reshape(1, W * C)
    shift_w = jnp.broadcast_to(shift.reshape(1, 1, C), (1, W, C)).reshape(1, W * C)
    return scale_w, shift_w


def _conv_stats_kernel(xp_ref, band_ref, y_ref, stats_ref, *, D, H, W, Cin, Cout):
    # xp_ref: (1, D+2, H+2, W*Cin) bf16, zero-padded in D/H only (W halo is in
    # the banded weight).
    _conv_band_stats(xp_ref, band_ref, y_ref, stats_ref,
                     D=D, H=H, W=W, Cin=Cin, Cout=Cout)


def _bn_relu_conv_stats_kernel(y_ref, stats_ref, g_ref, b_ref, band_ref,
                               yo_ref, so_ref, pad_ref, *,
                               D, H, W, Cin, Cout, count, eps):
    # BN(train)+ReLU of the previous layer fused with this layer's conv: the
    # normalized activation never round-trips through HBM.  The D/H halo lives
    # in a small bf16 VMEM scratch; the W halo lives in the banded weight.
    scale_w, shift_w = _bn_scale_shift(stats_ref, g_ref, b_ref,
                                       count=count, eps=eps, W=W, C=Cin)
    a = jnp.maximum(y_ref[...] * scale_w + shift_w, 0.0)              # (1, D, H, W*Cin)
    # Zero the halo scratch every grid step: scratch is per-core state under
    # "parallel" megacore sharding, so a program_id==0-only halo init would be
    # unsafe.  These are VMEM-local stores only (nothing extra goes to HBM).
    pad_ref[...] = jnp.zeros(pad_ref.shape, pad_ref.dtype)
    pad_ref[:, pl.ds(1, D), pl.ds(1, H), :] = a.astype(jnp.bfloat16)
    _conv_band_stats(pad_ref, band_ref, yo_ref, so_ref,
                     D=D, H=H, W=W, Cin=Cin, Cout=Cout)


def _bn_relu_pool_kernel(y_ref, stats_ref, g_ref, b_ref, o_ref, *,
                         mode, count, eps, W, C):
    D, H = y_ref.shape[1], y_ref.shape[2]
    scale_w, shift_w = _bn_scale_shift(stats_ref, g_ref, b_ref,
                                       count=count, eps=eps, W=W, C=C)
    val = jnp.maximum(y_ref[...] * scale_w + shift_w, 0.0)            # (1, D, H, W*C)
    if mode == "pool":
        # 2x2x2 max-pool: pool D and H (non-lane dims) first so the
        # lane-interleaved W step runs on the 4x smaller tensor.
        Do, Ho, Wo = D // 2, H // 2, W // 2
        v = val.reshape(Do, 2, H, W * C)
        v = jnp.maximum(v[:, 0, :, :], v[:, 1, :, :])                 # pool D
        v = v.reshape(Do, Ho, 2 * W * C)
        v = jnp.maximum(v[:, :, :W * C], v[:, :, W * C:])             # pool H
        v = v.reshape(Do, Ho * Wo, 2 * C)
        v = jnp.maximum(v[:, :, :C], v[:, :, C:])                     # pool W
        o_ref[...] = v.reshape(1, Do, Ho, Wo * C)
    else:
        o_ref[...] = val


# ------------------------------- wrappers ----------------------------------- #

def make_band_weights(w, W):
    """(3,3,3,Cin,Cout) conv weight -> (9, W*Cin, W*Cout) bf16 kw-folded band.

    band[kd*3+kh, wi*Cin+ci, wo*Cout+co] = w[kd, kh, wi-wo+1, ci, co] when
    0 <= wi-wo+1 < 3, else 0.  Zero rows implement the W-boundary zero padding,
    so activations carry no W halo in memory.
    """
    Cin, Cout = w.shape[3], w.shape[4]
    win = jnp.arange(W)[:, None]
    wout = jnp.arange(W)[None, :]
    sel = jnp.stack([(win - wout + 1 == kw).astype(w.dtype) for kw in range(3)],
                    axis=0)                                           # (3, W, W)
    band = jnp.einsum("kpq,dhkio->dhpiqo", sel, w)                    # (3,3,W,Cin,W,Cout)
    return band.reshape(9, W * Cin, W * Cout).astype(jnp.bfloat16)


def conv3d_stats(xp, band, *, D, H, W, Cin, Cout):
    N = xp.shape[0]
    return pl.pallas_call(
        functools.partial(_conv_stats_kernel, D=D, H=H, W=W, Cin=Cin, Cout=Cout),
        out_shape=(
            jax.ShapeDtypeStruct((N, D, H, W * Cout), jnp.float32),
            jax.ShapeDtypeStruct((N, 2, Cout), jnp.float32),
        ),
        grid=(N,),
        in_specs=[
            pl.BlockSpec((1, D + 2, H + 2, W * Cin), lambda n: (n, 0, 0, 0)),
            pl.BlockSpec((9, W * Cin, W * Cout), lambda n: (0, 0, 0)),
        ],
        out_specs=(
            pl.BlockSpec((1, D, H, W * Cout), lambda n: (n, 0, 0, 0)),
            pl.BlockSpec((1, 2, Cout), lambda n: (n, 0, 0)),
        ),
        compiler_params=_cparams(),
    )(xp, band)


def bn_relu_conv3d_stats(y, stats, gamma, beta, band, *, D, H, W, Cin, Cout,
                         eps=_BN_EPS):
    N = y.shape[0]
    count = float(N * D * H * W)
    return pl.pallas_call(
        functools.partial(_bn_relu_conv_stats_kernel, D=D, H=H, W=W, Cin=Cin,
                          Cout=Cout, count=count, eps=eps),
        out_shape=(
            jax.ShapeDtypeStruct((N, D, H, W * Cout), jnp.float32),
            jax.ShapeDtypeStruct((N, 2, Cout), jnp.float32),
        ),
        grid=(N,),
        in_specs=[
            pl.BlockSpec((1, D, H, W * Cin), lambda n: (n, 0, 0, 0)),
            pl.BlockSpec((N, 2, Cin), lambda n: (0, 0, 0)),
            pl.BlockSpec((1, Cin), lambda n: (0, 0)),
            pl.BlockSpec((1, Cin), lambda n: (0, 0)),
            pl.BlockSpec((9, W * Cin, W * Cout), lambda n: (0, 0, 0)),
        ],
        out_specs=(
            pl.BlockSpec((1, D, H, W * Cout), lambda n: (n, 0, 0, 0)),
            pl.BlockSpec((1, 2, Cout), lambda n: (n, 0, 0)),
        ),
        scratch_shapes=[pltpu.VMEM((1, D + 2, H + 2, W * Cin), jnp.bfloat16)],
        compiler_params=_cparams(),
    )(y, stats, gamma.reshape(1, Cin), beta.reshape(1, Cin), band)


def bn_relu_pool(y, stats, gamma, beta, *, D, H, W, C, mode, eps=_BN_EPS):
    N = y.shape[0]
    count = float(N * D * H * W)
    if mode == "pool":
        out_shape = jax.ShapeDtypeStruct((N, D // 2, H // 2, (W // 2) * C), jnp.float32)
        out_spec = pl.BlockSpec((1, D // 2, H // 2, (W // 2) * C), lambda n: (n, 0, 0, 0))
    else:
        out_shape = jax.ShapeDtypeStruct((N, D, H, W * C), jnp.float32)
        out_spec = pl.BlockSpec((1, D, H, W * C), lambda n: (n, 0, 0, 0))
    return pl.pallas_call(
        functools.partial(_bn_relu_pool_kernel, mode=mode, count=count, eps=eps,
                          W=W, C=C),
        out_shape=out_shape,
        grid=(N,),
        in_specs=[
            pl.BlockSpec((1, D, H, W * C), lambda n: (n, 0, 0, 0)),
            pl.BlockSpec((N, 2, C), lambda n: (0, 0, 0)),
            pl.BlockSpec((1, C), lambda n: (0, 0)),
            pl.BlockSpec((1, C), lambda n: (0, 0)),
        ],
        out_specs=out_spec,
        compiler_params=_cparams(),
    )(y, stats, gamma.reshape(1, C), beta.reshape(1, C))


# --------------------------- ConvBlock assembly ----------------------------- #

def init_conv_block_params(key, in_features, out_features, num):
    params = []
    cin = in_features
    for _ in range(num):
        key, k1, k2, k3, k4 = jax.random.split(key, 5)
        fan_in = cin * 27
        w = jax.random.normal(k1, (3, 3, 3, cin, out_features), jnp.float32) / jnp.sqrt(fan_in)
        b = 0.1 * jax.random.normal(k2, (out_features,), jnp.float32)
        gamma = 1.0 + 0.1 * jax.random.normal(k3, (out_features,), jnp.float32)
        beta = 0.1 * jax.random.normal(k4, (out_features,), jnp.float32)
        params.append((w, b, gamma, beta))
        cin = out_features
    return params


def conv_block_forward(x_ncdhw, params, pool=True):
    N, Cin, D, H, W = x_ncdhw.shape
    if pool:
        assert D % 2 == 0 and H % 2 == 0 and W % 2 == 0, \
            "2x2x2 max-pool path assumes even spatial dims"
    x = jnp.transpose(x_ncdhw, (0, 2, 3, 4, 1))                   # NCDHW -> NDHWC
    # One-time D/H halo pad + channel pack (bf16, matching the MXU operand
    # precision).  The W halo is handled by the banded weights, so all HBM
    # activation blocks stay lane-dense and unpadded.
    xp = jnp.pad(x, ((0, 0), (1, 1), (1, 1), (0, 0), (0, 0)))
    xp = xp.reshape(N, D + 2, H + 2, W * Cin).astype(jnp.bfloat16)

    num = len(params)
    bands = [make_band_weights(w, W) for (w, _, _, _) in params]
    # Conv bias is dropped in the kernels: it is exactly cancelled by the
    # BatchNorm mean subtraction that always follows each conv.

    cout0 = params[0][0].shape[-1]
    y, stats = conv3d_stats(xp, bands[0], D=D, H=H, W=W, Cin=Cin, Cout=cout0)
    cin = cout0
    for li in range(1, num):
        cout = params[li][0].shape[-1]
        g_prev, b_prev = params[li - 1][2], params[li - 1][3]
        y, stats = bn_relu_conv3d_stats(y, stats, g_prev, b_prev, bands[li],
                                        D=D, H=H, W=W, Cin=cin, Cout=cout)
        cin = cout

    g_last, b_last = params[-1][2], params[-1][3]
    out = bn_relu_pool(y, stats, g_last, b_last, D=D, H=H, W=W, C=cin,
                       mode=("pool" if pool else "plain"))
    if pool:
        out = out.reshape(N, D // 2, H // 2, W // 2, cin)
    else:
        out = out.reshape(N, D, H, W, cin)
    return jnp.transpose(out, (0, 4, 1, 2, 3))                    # NDHWC -> NCDHW
    # TODO(synk): BatchNorm3d running_mean/running_var momentum updates are not
    # emitted (buffers only; they do not affect this forward output).


def conv_block_reference(x_ncdhw, params, pool=True, eps=_BN_EPS):
    # Pure-JAX reference with matching mixed precision: bf16 MXU operands,
    # f32 accumulation, f32 BatchNorm(train)/ReLU/pool math (bias included).
    x = jnp.transpose(x_ncdhw, (0, 2, 3, 4, 1))
    for (w, b, gamma, beta) in params:
        y = lax.conv_general_dilated(
            x.astype(jnp.bfloat16), w.astype(jnp.bfloat16),
            window_strides=(1, 1, 1), padding="SAME",
            dimension_numbers=("NDHWC", "DHWIO", "NDHWC"),
            preferred_element_type=jnp.float32) + b
        mean = jnp.mean(y, axis=(0, 1, 2, 3))
        var = jnp.mean((y - mean) ** 2, axis=(0, 1, 2, 3))
        x = jnp.maximum((y - mean) * lax.rsqrt(var + eps) * gamma + beta, 0.0)
    if pool:
        x = lax.reduce_window(x, -jnp.inf, lax.max,
                              (1, 2, 2, 2, 1), (1, 2, 2, 2, 1), "VALID")
    return jnp.transpose(x, (0, 4, 1, 2, 3))


if __name__ == "__main__":
    N, Cin, Cout, D, H, W, num = 2, 4, 8, 8, 8, 8, 2
    key = jax.random.PRNGKey(0)
    key, xkey = jax.random.split(key)
    x = jax.random.normal(xkey, (N, Cin, D, H, W), jnp.float32)   # PyTorch NCDHW
    params = init_conv_block_params(key, Cin, Cout, num)

    out = conv_block_forward(x, params, pool=True)
    out = jax.block_until_ready(out)

    assert out.shape == (N, Cout, D // 2, H // 2, W // 2), out.shape
    ref = conv_block_reference(x, params, pool=True)
    if not bool(jnp.allclose(out, ref, rtol=1e-3, atol=1e-3)):
        max_err = float(jnp.max(jnp.abs(out - ref)))
        raise AssertionError(f"Pallas ConvBlock mismatch vs JAX reference (max abs err {max_err})")
    print("KERNEL_OK")
</pallas_src>

<mosaic_0001>
module attributes {stable_mosaic.version = 11 : i64} {
  func.func @_conv_stats_kernel(%arg0: i32, %arg1: memref<1x10x10x32xbf16, #tpu.memory_space<vmem>>, %arg2: memref<9x32x64xbf16, #tpu.memory_space<vmem>>, %arg3: memref<1x8x8x64xf32, #tpu.memory_space<vmem>>, %arg4: memref<1x2x8xf32, #tpu.memory_space<vmem>>) attributes {dimension_semantics = [#tpu.dimension_semantics<parallel>], iteration_bounds = array<i64: 2>, scalar_prefetch = 0 : i64, scratch_operands = 0 : i64, tpu.core_type = #tpu.core_type<tc>, window_params = [{transform_indices = @transform_0, window_bounds = array<i64: 1, 10, 10, 32>}, {pipeline_mode = #tpu.pipeline_mode<synchronous>, transform_indices = @transform_1, window_bounds = array<i64: 9, 32, 64>}, {transform_indices = @transform_2, window_bounds = array<i64: 1, 8, 8, 64>}, {transform_indices = @transform_3, window_bounds = array<i64: 1, 2, 8>}]} {
    %cst = arith.constant 0.000000e+00 : f32
    %0 = vector.broadcast %cst : f32 to vector<64x64xf32>
    %c0 = arith.constant 0 : index
    %c0_0 = arith.constant 0 : index
    %c0_1 = arith.constant 0 : index
    %c0_2 = arith.constant 0 : index
    %1 = vector.load %arg1[%c0, %c0_0, %c0_1, %c0_2] : memref<1x10x10x32xbf16, #tpu.memory_space<vmem>>, vector<1x8x8x32xbf16>
    %2 = vector.shape_cast %1 : vector<1x8x8x32xbf16> to vector<8x8x32xbf16>
    %3 = vector.shape_cast %2 : vector<8x8x32xbf16> to vector<64x32xbf16>
    %c0_3 = arith.constant 0 : index
    %c0_4 = arith.constant 0 : index
    %c0_5 = arith.constant 0 : index
    %4 = vector.load %arg2[%c0_3, %c0_4, %c0_5] : memref<9x32x64xbf16, #tpu.memory_space<vmem>>, vector<1x32x64xbf16>
    %5 = vector.shape_cast %4 : vector<1x32x64xbf16> to vector<32x64xbf16>
    %cst_6 = arith.constant dense<0.000000e+00> : vector<64x64xf32>
    %6 = tpu.matmul %3, %5, %cst_6 {dimension_numbers = #tpu.dot_dimension_numbers<[1], [0], [0], [1], [0, 0, 1, 1], [], []>} : vector<64x32xbf16>, vector<32x64xbf16>, vector<64x64xf32> -> vector<64x64xf32>
    %7 = arith.addf %0, %6 : vector<64x64xf32>
    %c0_7 = arith.constant 0 : index
    %c0_8 = arith.constant 0 : index
    %c1 = arith.constant 1 : index
    %c0_9 = arith.constant 0 : index
    %8 = vector.load %arg1[%c0_7, %c0_8, %c1, %c0_9] : memref<1x10x10x32xbf16, #tpu.memory_space<vmem>>, vector<1x8x8x32xbf16>
    %9 = vector.shape_cast %8 : vector<1x8x8x32xbf16> to vector<8x8x32xbf16>
    %10 = vector.shape_cast %9 : vector<8x8x32xbf16> to vector<64x32xbf16>
    %c1_10 = arith.constant 1 : index
    %c0_11 = arith.constant 0 : index
    %c0_12 = arith.constant 0 : index
    %11 = vector.load %arg2[%c1_10, %c0_11, %c0_12] : memref<9x32x64xbf16, #tpu.memory_space<vmem>>, vector<1x32x64xbf16>
    %12 = vector.shape_cast %11 : vector<1x32x64xbf16> to vector<32x64xbf16>
    %cst_13 = arith.constant dense<0.000000e+00> : vector<64x64xf32>
    %13 = tpu.matmul %10, %12, %cst_13 {dimension_numbers = #tpu.dot_dimension_numbers<[1], [0], [0], [1], [0, 0, 1, 1], [], []>} : vector<64x32xbf16>, vector<32x64xbf16>, vector<64x64xf32> -> vector<64x64xf32>
    %14 = arith.addf %7, %13 : vector<64x64xf32>
    %c0_14 = arith.constant 0 : index
    %c0_15 = arith.constant 0 : index
    %c2 = arith.constant 2 : index
    %c0_16 = arith.constant 0 : index
    %15 = vector.load %arg1[%c0_14, %c0_15, %c2, %c0_16] : memref<1x10x10x32xbf16, #tpu.memory_space<vmem>>, vector<1x8x8x32xbf16>
    %16 = vector.shape_cast %15 : vector<1x8x8x32xbf16> to vector<8x8x32xbf16>
    %17 = vector.shape_cast %16 : vector<8x8x32xbf16> to vector<64x32xbf16>
    %c2_17 = arith.constant 2 : index
    %c0_18 = arith.constant 0 : index
    %c0_19 = arith.constant 0 : index
    %18 = vector.load %arg2[%c2_17, %c0_18, %c0_19] : memref<9x32x64xbf16, #tpu.memory_space<vmem>>, vector<1x32x64xbf16>
    %19 = vector.shape_cast %18 : vector<1x32x64xbf16> to vector<32x64xbf16>
    %cst_20 = arith.constant dense<0.000000e+00> : vector<64x64xf32>
    %20 = tpu.matmul %17, %19, %cst_20 {dimension_numbers = #tpu.dot_dimension_numbers<[1], [0], [0], [1], [0, 0, 1, 1], [], []>} : vector<64x32xbf16>, vector<32x64xbf16>, vector<64x64xf32> -> vector<64x64xf32>
    %21 = arith.addf %14, %20 : vector<64x64xf32>
    %c0_21 = arith.constant 0 : index
    %c1_22 = arith.constant 1 : index
    %c0_23 = arith.constant 0 : index
    %c0_24 = arith.constant 0 : index
    %22 = vector.load %arg1[%c0_21, %c1_22, %c0_23, %c0_24] : memref<1x10x10x32xbf16, #tpu.memory_space<vmem>>, vector<1x8x8x32xbf16>
    %23 = vector.shape_cast %22 : vector<1x8x8x32xbf16> to vector<8x8x32xbf16>
    %24 = vector.shape_cast %23 : vector<8x8x32xbf16> to vector<64x32xbf16>
    %c3 = arith.constant 3 : index
    %c0_25 = arith.constant 0 : index
    %c0_26 = arith.constant 0 : index
    %25 = vector.load %arg2[%c3, %c0_25, %c0_26] : memref<9x32x64xbf16, #tpu.memory_space<vmem>>, vector<1x32x64xbf16>
    %26 = vector.shape_cast %25 : vector<1x32x64xbf16> to vector<32x64xbf16>
    %cst_27 = arith.constant dense<0.000000e+00> : vector<64x64xf32>
    %27 = tpu.matmul %24, %26, %cst_27 {dimension_numbers = #tpu.dot_dimension_numbers<[1], [0], [0], [1], [0, 0, 1, 1], [], []>} : vector<64x32xbf16>, vector<32x64xbf16>, vector<64x64xf32> -> vector<64x64xf32>
    %28 = arith.addf %21, %27 : vector<64x64xf32>
    %c0_28 = arith.constant 0 : index
    %c1_29 = arith.constant 1 : index
    %c1_30 = arith.constant 1 : index
    %c0_31 = arith.constant 0 : index
    %29 = vector.load %arg1[%c0_28, %c1_29, %c1_30, %c0_31] : memref<1x10x10x32xbf16, #tpu.memory_space<vmem>>, vector<1x8x8x32xbf16>
    %30 = vector.shape_cast %29 : vector<1x8x8x32xbf16> to vector<8x8x32xbf16>
    %31 = vector.shape_cast %30 : vector<8x8x32xbf16> to vector<64x32xbf16>
    %c4 = arith.constant 4 : index
    %c0_32 = arith.constant 0 : index
    %c0_33 = arith.constant 0 : index
    %32 = vector.load %arg2[%c4, %c0_32, %c0_33] : memref<9x32x64xbf16, #tpu.memory_space<vmem>>, vector<1x32x64xbf16>
    %33 = vector.shape_cast %32 : vector<1x32x64xbf16> to vector<32x64xbf16>
    %cst_34 = arith.constant dense<0.000000e+00> : vector<64x64xf32>
    %34 = tpu.matmul %31, %33, %cst_34 {dimension_numbers = #tpu.dot_dimension_numbers<[1], [0], [0], [1], [0, 0, 1, 1], [], []>} : vector<64x32xbf16>, vector<32x64xbf16>, vector<64x64xf32> -> vector<64x64xf32>
    %35 = arith.addf %28, %34 : vector<64x64xf32>
    %c0_35 = arith.constant 0 : index
    %c1_36 = arith.constant 1 : index
    %c2_37 = arith.constant 2 : index
    %c0_38 = arith.constant 0 : index
    %36 = vector.load %arg1[%c0_35, %c1_36, %c2_37, %c0_38] : memref<1x10x10x32xbf16, #tpu.memory_space<vmem>>, vector<1x8x8x32xbf16>
    %37 = vector.shape_cast %36 : vector<1x8x8x32xbf16> to vector<8x8x32xbf16>
    %38 = vector.shape_cast %37 : vector<8x8x32xbf16> to vector<64x32xbf16>
    %c5 = arith.constant 5 : index
    %c0_39 = arith.constant 0 : index
    %c0_40 = arith.constant 0 : index
    %39 = vector.load %arg2[%c5, %c0_39, %c0_40] : memref<9x32x64xbf16, #tpu.memory_space<vmem>>, vector<1x32x64xbf16>
    %40 = vector.shape_cast %39 : vector<1x32x64xbf16> to vector<32x64xbf16>
    %cst_41 = arith.constant dense<0.000000e+00> : vector<64x64xf32>
    %41 = tpu.matmul %38, %40, %cst_41 {dimension_numbers = #tpu.dot_dimension_numbers<[1], [0], [0], [1], [0, 0, 1, 1], [], []>} : vector<64x32xbf16>, vector<32x64xbf16>, vector<64x64xf32> -> vector<64x64xf32>
    %42 = arith.addf %35, %41 : vector<64x64xf32>
    %c0_42 = arith.constant 0 : index
    %c2_43 = arith.constant 2 : index
    %c0_44 = arith.constant 0 : index
    %c0_45 = arith.constant 0 : index
    %43 = vector.load %arg1[%c0_42, %c2_43, %c0_44, %c0_45] : memref<1x10x10x32xbf16, #tpu.memory_space<vmem>>, vector<1x8x8x32xbf16>
    %44 = vector.shape_cast %43 : vector<1x8x8x32xbf16> to vector<8x8x32xbf16>
    %45 = vector.shape_cast %44 : vector<8x8x32xbf16> to vector<64x32xbf16>
    %c6 = arith.constant 6 : index
    %c0_46 = arith.constant 0 : index
    %c0_47 = arith.constant 0 : index
    %46 = vector.load %arg2[%c6, %c0_46, %c0_47] : memref<9x32x64xbf16, #tpu.memory_space<vmem>>, vector<1x32x64xbf16>
    %47 = vector.shape_cast %46 : vector<1x32x64xbf16> to vector<32x64xbf16>
    %cst_48 = arith.constant dense<0.000000e+00> : vector<64x64xf32>
    %48 = tpu.matmul %45, %47, %cst_48 {dimension_numbers = #tpu.dot_dimension_numbers<[1], [0], [0], [1], [0, 0, 1, 1], [], []>} : vector<64x32xbf16>, vector<32x64xbf16>, vector<64x64xf32> -> vector<64x64xf32>
    %49 = arith.addf %42, %48 : vector<64x64xf32>
    %c0_49 = arith.constant 0 : index
    %c2_50 = arith.constant 2 : index
    %c1_51 = arith.constant 1 : index
    %c0_52 = arith.constant 0 : index
    %50 = vector.load %arg1[%c0_49, %c2_50, %c1_51, %c0_52] : memref<1x10x10x32xbf16, #tpu.memory_space<vmem>>, vector<1x8x8x32xbf16>
    %51 = vector.shape_cast %50 : vector<1x8x8x32xbf16> to vector<8x8x32xbf16>
    %52 = vector.shape_cast %51 : vector<8x8x32xbf16> to vector<64x32xbf16>
    %c7 = arith.constant 7 : index
    %c0_53 = arith.constant 0 : index
    %c0_54 = arith.constant 0 : index
    %53 = vector.load %arg2[%c7, %c0_53, %c0_54] : memref<9x32x64xbf16, #tpu.memory_space<vmem>>, vector<1x32x64xbf16>
    %54 = vector.shape_cast %53 : vector<1x32x64xbf16> to vector<32x64xbf16>
    %cst_55 = arith.constant dense<0.000000e+00> : vector<64x64xf32>
    %55 = tpu.matmul %52, %54, %cst_55 {dimension_numbers = #tpu.dot_dimension_numbers<[1], [0], [0], [1], [0, 0, 1, 1], [], []>} : vector<64x32xbf16>, vector<32x64xbf16>, vector<64x64xf32> -> vector<64x64xf32>
    %56 = arith.addf %49, %55 : vector<64x64xf32>
    %c0_56 = arith.constant 0 : index
    %c2_57 = arith.constant 2 : index
    %c2_58 = arith.constant 2 : index
    %c0_59 = arith.constant 0 : index
    %57 = vector.load %arg1[%c0_56, %c2_57, %c2_58, %c0_59] : memref<1x10x10x32xbf16, #tpu.memory_space<vmem>>, vector<1x8x8x32xbf16>
    %58 = vector.shape_cast %57 : vector<1x8x8x32xbf16> to vector<8x8x32xbf16>
    %59 = vector.shape_cast %58 : vector<8x8x32xbf16> to vector<64x32xbf16>
    %c8 = arith.constant 8 : index
    %c0_60 = arith.constant 0 : index
    %c0_61 = arith.constant 0 : index
    %60 = vector.load %arg2[%c8, %c0_60, %c0_61] : memref<9x32x64xbf16, #tpu.memory_space<vmem>>, vector<1x32x64xbf16>
    %61 = vector.shape_cast %60 : vector<1x32x64xbf16> to vector<32x64xbf16>
    %cst_62 = arith.constant dense<0.000000e+00> : vector<64x64xf32>
    %62 = tpu.matmul %59, %61, %cst_62 {dimension_numbers = #tpu.dot_dimension_numbers<[1], [0], [0], [1], [0, 0, 1, 1], [], []>} : vector<64x32xbf16>, vector<32x64xbf16>, vector<64x64xf32> -> vector<64x64xf32>
    %63 = arith.addf %56, %62 : vector<64x64xf32>
    %cst_63 = arith.constant dense<0.000000e+00> : vector<64xf32>
    %64 = vector.multi_reduction <add>, %63, %cst_63 [0] : vector<64x64xf32> to vector<64xf32>
    %65 = vector.shape_cast %64 : vector<64xf32> to vector<1x64xf32>
    %66 = arith.mulf %63, %63 : vector<64x64xf32>
    %cst_64 = arith.constant dense<0.000000e+00> : vector<64xf32>
    %67 = vector.multi_reduction <add>, %66, %cst_64 [0] : vector<64x64xf32> to vector<64xf32>
    %68 = vector.shape_cast %67 : vector<64xf32> to vector<1x64xf32>
    %69 = tpu.concatenate %65, %68 in 0 : vector<1x64xf32>, vector<1x64xf32> -> vector<2x64xf32>
    %70 = vector.extract_strided_slice %69 {offsets = [0, 0], sizes = [2, 8], strides = [1, 1]} : vector<2x64xf32> to vector<2x8xf32>
    %71 = vector.extract_strided_slice %69 {offsets = [0, 8], sizes = [2, 8], strides = [1, 1]} : vector<2x64xf32> to vector<2x8xf32>
    %72 = arith.addf %70, %71 : vector<2x8xf32>
    %73 = vector.extract_strided_slice %69 {offsets = [0, 16], sizes = [2, 8], strides = [1, 1]} : vector<2x64xf32> to vector<2x8xf32>
    %74 = arith.addf %72, %73 : vector<2x8xf32>
    %75 = vector.extract_strided_slice %69 {offsets = [0, 24], sizes = [2, 8], strides = [1, 1]} : vector<2x64xf32> to vector<2x8xf32>
    %76 = arith.addf %74, %75 : vector<2x8xf32>
    %77 = vector.extract_strided_slice %69 {offsets = [0, 32], sizes = [2, 8], strides = [1, 1]} : vector<2x64xf32> to vector<2x8xf32>
    %78 = arith.addf %76, %77 : vector<2x8xf32>
    %79 = vector.extract_strided_slice %69 {offsets = [0, 40], sizes = [2, 8], strides = [1, 1]} : vector<2x64xf32> to vector<2x8xf32>
    %80 = arith.addf %78, %79 : vector<2x8xf32>
    %81 = vector.extract_strided_slice %69 {offsets = [0, 48], sizes = [2, 8], strides = [1, 1]} : vector<2x64xf32> to vector<2x8xf32>
    %82 = arith.addf %80, %81 : vector<2x8xf32>
    %83 = vector.extract_strided_slice %69 {offsets = [0, 56], sizes = [2, 8], strides = [1, 1]} : vector<2x64xf32> to vector<2x8xf32>
    %84 = arith.addf %82, %83 : vector<2x8xf32>
    %85 = vector.shape_cast %84 : vector<2x8xf32> to vector<1x2x8xf32>
    %c0_65 = arith.constant 0 : index
    %c0_66 = arith.constant 0 : index
    %c0_67 = arith.constant 0 : index
    %86 = vector.load %arg4[%c0_65, %c0_66, %c0_67] : memref<1x2x8xf32, #tpu.memory_space<vmem>>, vector<1x2x8xf32>
    tpu.vector_store %arg4[%c0_65, %c0_66, %c0_67], %85 {strides = array<i32>} : memref<1x2x8xf32, #tpu.memory_space<vmem>>, vector<1x2x8xf32>,
    %87 = vector.shape_cast %63 : vector<64x64xf32> to vector<1x8x8x64xf32>
    %c0_68 = arith.constant 0 : index
    %c0_69 = arith.constant 0 : index
    %c0_70 = arith.constant 0 : index
    %c0_71 = arith.constant 0 : index
    %88 = vector.load %arg3[%c0_68, %c0_69, %c0_70, %c0_71] : memref<1x8x8x64xf32, #tpu.memory_space<vmem>>, vector<1x8x8x64xf32>
    tpu.vector_store %arg3[%c0_68, %c0_69, %c0_70, %c0_71], %87 {strides = array<i32>} : memref<1x8x8x64xf32, #tpu.memory_space<vmem>>, vector<1x8x8x64xf32>,
    return
  }
  func.func @transform_0(%arg0: i32) -> (i32, i32, i32, i32) {
    %c0_i32 = arith.constant 0 : i32
    %c0_i32_0 = arith.constant 0 : i32
    %c0_i32_1 = arith.constant 0 : i32
    %c0_i32_2 = arith.constant 0 : i32
    return %arg0, %c0_i32, %c0_i32_0, %c0_i32_1 : i32, i32, i32, i32
  }
  func.func @transform_1(%arg0: i32) -> (i32, i32, i32) {
    %c0_i32 = arith.constant 0 : i32
    %c0_i32_0 = arith.constant 0 : i32
    %c0_i32_1 = arith.constant 0 : i32
    %c0_i32_2 = arith.constant 0 : i32
    return %c0_i32, %c0_i32_0, %c0_i32_1 : i32, i32, i32
  }
  func.func @transform_2(%arg0: i32) -> (i32, i32, i32, i32) {
    %c0_i32 = arith.constant 0 : i32
    %c0_i32_0 = arith.constant 0 : i32
    %c0_i32_1 = arith.constant 0 : i32
    %c0_i32_2 = arith.constant 0 : i32
    return %arg0, %c0_i32, %c0_i32_0, %c0_i32_1 : i32, i32, i32, i32
  }
  func.func @transform_3(%arg0: i32) -> (i32, i32, i32) {
    %c0_i32 = arith.constant 0 : i32
    %c0_i32_0 = arith.constant 0 : i32
    %c0_i32_1 = arith.constant 0 : i32
    return %arg0, %c0_i32, %c0_i32_0 : i32, i32, i32
  }
}

</mosaic_0001>

<bundles_post_ra>
// kernel: tpu_custom_call.1
= control target key start
LH: loop header
LB: loop body
LE: loop exit
PB: predicated region body
PF: predicated region fallthrough
CT: control target
= control target key end

     0   :  { %9 = vsyncpa [#allocation3], 0  ;;  %s3244_s0 = inlined_call_operand.vmem [shape: bf16[2,10,10,32], index: 0, kind: input, shape index: {}]   ;;  %s3245_s1 = inlined_call_operand.vmem [shape: bf16[9,32,64], index: 1, kind: input, shape index: {}]   ;;  %s3246_s2 = inlined_call_operand.hbm [shape: f32[2,8,8,64], index: 2, kind: output, shape index: {0}]   ;;  %s3247_s3 = inlined_call_operand.hbm [shape: f32[2,2,8], index: 3, kind: output, shape index: {1}]  }
   0x1   :  { %11 = vsyncpa [#allocation3 + $0x1], 0 }
   0x2   :  { %12 = vsyncpa [#allocation5], 0 }
   0x3   :  { %14 = vsyncpa [#allocation5 + $0x1], 0  ;;  %s2607_s12 = smov 0   ;;  %s2609_s13 = smov 0  }
   0x4   :  { %s2611_s14 = smov 0   ;;  %s2613_s15 = smov 0  }
   0x5 LB: > { %s2628_s16 = sadd.s32 4294967295, %s2574_s15   ;;  %s2009_s17 = sadd.s32 4294967294, %s2574_s15   ;;  %s2574_s15 = sphi %s2613_s15, %s3257_s15   ;;  %s2570_s14 = sphi %s2611_s14, %s3256_s14   ;;  %s2566_s13 = sphi %s2609_s13, %s3255_s13   ;;  %s2562_s12 = sphi %s2607_s12, %s3254_s12  }
   0x6   : > { %s2632_s18 = sadd.s32 1, %s2574_s15   ;;  %s74_s19 = sadd.s32 1, %s2570_s14 }
   0x7   : > { %s71_s20 = ssub.s32 %s2574_s15, %s2632_s18  ;;  %p84_p0 = scmp.ne.s32.totalorder %s2570_s14, %s2566_s13 }
   0x8   : > { %p72_p1 = scmp.eq.s32.totalorder %s71_s20, 0  ;;  %p85_p2 = scmp.eq.s32.totalorder %s2628_s16, 1 }
   0x9   : > { %p90_p3 = scmp.ne.s32.totalorder %s2566_s13, %s2562_s12  ;;  %p91_p4 = scmp.eq.s32.totalorder %s2009_s17, 1 }
   0xa   : > { %s2643_s21 = scalar_select %p72_p1, %s2570_s14, %s74_s19  }
   0xb   : > { %p2645_p5 = por %p85_p2, %p84_p0  ;;  %p2649_p6 = por %p91_p4, %p90_p3 }
   0xc   : > { %p2012_p7 = scmp.ge.s32.totalorder %s2574_s15, 1  ;;  %p146_p8 = scmp.lt.s32.totalorder %s2574_s15, 3 }
   0xe   : > { %p147_p9 = pnand %p2012_p7, %p146_p8 }
   0xf   : > { %p175_p10 = scmp.lt.s32.totalorder (!%p147_p9), %s2628_s16, 1  ;;  %s2576_s5 = smov (!%p147_p9), 104  }
  0x10   : > { %150 = sbr.rel (%p147_p9) target bundleno = 496 (0x1f0), region = 28  ;;  %s2577_s6 = smov (!%p147_p9), 120  }
  0x11   : > { %s2233_s7 = sshll.u32 (!%p147_p9), %s2628_s16, 10  ;;  %s2578_s19 = smov (!%p147_p9), 96  }
  0x12   : > { %s3182_s17 = scalar_lea.hbm (!%p147_p9), %s3246_s2, %s2233_s7  ;;  %s2579_s20 = smov (!%p147_p9), 112  }
  0x13   : > { %s2580_s26 = smov (!%p147_p9), [#allocation2]  }
  0x14   : > { %s2488_s27 = sshll.u32 (!%p147_p9), %s2580_s26, 4  ;;  %s2489_s27 = int_to_ptr.vmem [resolvable:$false] %s2488_s27 }
  0x15   : > { %v2454_v0 = vld [vmem:[%s3245_s1 + $0x18] sm:$0xff]   ;;  %v2455_v1 = vld [vmem:[%s3245_s1 + $0x10] sm:$0xff]   ;;  %s176_s28 = scalar_select %p175_p10, %s2628_s16, 1  ;;  %v2666_v2 = vld [vmem:[%s3245_s1 + $0x8] sm:$0xff]   ;;  %vm201_vm0 = vsmask.f32 3328 }
  0x16   : > { %2396 = vmatprep.subr.bf16.mxu1 %v2454_v0  ;;  %2288 = vmatprep.subr.bf16.mxu0 %v2454_v0  ;;  %v2671_v3 = vld [vmem:[%s3245_s1 + $0x28] sm:$0xff]   ;;  %vm202_vm1 = vsmask.f32 7440  ;;  %vm345_vm2 = vcmask 261120   ;;  %vm556_vm4 = vcmask 1042432   ;;  %vm557_vm5 = vcmask 1046532  }
  0x17   : > { %2398 = vmatpush3.bf16.msra.mxu1 %v2454_v0  ;;  %2289 = vmatpush3.bf16.msra.mxu0 %v2454_v0  ;;  %s2400_s4 = smul.u32 80, %s176_s28  ;;  %vm2717_vm3 = vmor %vm201_vm0, %vm202_vm1  ;;  %vm1791_vm7 = vcmask 523264   ;;  %vm1842_vm8 = vcmask 1040384   ;;  %s2490_s28 = scalar_lea.vmem %s2489_s27, 2048 }
  0x18   : > { %2397 = vmatprep.subr.bf16.mxu1 %v2455_v1  ;;  %2290 = vmatprep.subr.bf16.mxu0 %v2455_v1  ;;  %vm2781_vm6 = vmor %vm556_vm4, %vm557_vm5 }
  0x19   : > { %s2676_s9 = scalar_lea.vmem %s3244_s0, %s2400_s4 }
  0x1a   : > { %v2679_v4 = vld [vmem:[%s2676_s9] sm:$0xf]  ;;  %v2682_v5 = vld [vmem:[%s2676_s9 + $0x8] sm:$0xf]  ;;  %v2685_v6 = vld [vmem:[%s2676_s9 + $0x4] sm:$0x1] }
  0x1b   : > { %2399 = vmatpush3.bf16.msra.mxu1 %v2455_v1  ;;  %2291 = vmatpush3.bf16.msra.mxu0 %v2455_v1  ;;  %v2688_v7 = vld [vmem:[%s2676_s9 + $0xc] sm:$0x1]  ;;  %v205_v8 = vshrl.u32 %v2679_v4, 16  ;;  %v208_v9 = vshll.u32 %v2679_v4, 16  ;;  %v214_v10 = vshll.u32 %v2685_v6, 16  ;;  %v219_v11 = vshrl.u32 %v2682_v5, 16 }
  0x1c   : > { %2300 = vmatprep.subr.bf16.mxu1 %v2666_v2  ;;  %2312 = vmatprep.subr.bf16.mxu0 %v2671_v3  ;;  %v222_v12 = vshll.u32 %v2682_v5, 16  ;;  %v228_v13 = vshll.u32 %v2688_v7, 16  ;;  %v561_v14 = vrot.slane %v2685_v6, 5  ;;  %v565_v15 = vrot.slane %v2688_v7, 5  ;;  %v2701_v16 = vld [vmem:[%s2676_s9 + $0x20] sm:$0xf] }
  0x1d   : > { %v207_v17 = vrot.slane %v205_v8, 4  ;;  %v210_v18 = vrot.slane %v208_v9, 5  ;;  %v216_v19 = vrot.slane %v214_v10, 5  ;;  %v221_v20 = vrot.slane %v219_v11, 4  ;;  %v2704_v21 = vld [vmem:[%s2676_s9 + $0x28] sm:$0xf] }
  0x1e   : > { %v224_v22 = vrot.slane %v222_v12, 5  ;;  %v230_v23 = vrot.slane %v228_v13, 5  ;;  %v2707_v24 = vld [vmem:[%s2676_s9 + $0x24] sm:$0x1]  ;;  %v2710_v25 = vld [vmem:[%s2676_s9 + $0x2c] sm:$0x1] }
  0x1f   : > { %v211_v26 = vor.u32 %v210_v18, %v207_v17  ;;  %v261_v27 = vshrl.u32 %v2701_v16, 16  ;;  %v264_v28 = vshll.u32 %v2701_v16, 16  ;;  %v270_v29 = vshll.u32 %v2707_v24, 16  ;;  %v2725_v35 = vld [vmem:[%s2676_s9 + $0x10] sm:$0xf]  ;;  %v2458_v7 = vld [vmem:[%s3245_s1] sm:$0xff]  }
  0x20   : > { %v225_v31 = vor.u32 %v224_v22, %v221_v20  ;;  %v275_v32 = vshrl.u32 %v2704_v21, 16  ;;  %v278_v33 = vshll.u32 %v2704_v21, 16  ;;  %v284_v34 = vshll.u32 %v2710_v25, 16  ;;  %v2728_v40 = vld [vmem:[%s2676_s9 + $0x18] sm:$0xf] }
  0x21   : > { %v212_v36 = vrot.slane %v211_v26, 4  ;;  %v263_v37 = vrot.slane %v261_v27, 4  ;;  %v266_v38 = vrot.slane %v264_v28, 5  ;;  %v272_v39 = vrot.slane %v270_v29, 5  ;;  %v2731_v45 = vld [vmem:[%s2676_s9 + $0x14] sm:$0x1] }
  0x22   : > { %v226_v41 = vrot.slane %v225_v31, 4  ;;  %v277_v42 = vrot.slane %v275_v32, 4  ;;  %v280_v43 = vrot.slane %v278_v33, 5  ;;  %v286_v44 = vrot.slane %v284_v34, 5  ;;  %v2740_v52 = vld [vmem:[%s2676_s9 + $0x1c] sm:$0x1] }
  0x23   : > { %v217_v46 = vsel %vm2717_vm3, %v212_v36, %v216_v19  ;;  %v267_v47 = vor.u32 %v266_v38, %v263_v37  ;;  %v577_v48 = vrot.slane %v2707_v24, 5  ;;  %v581_v49 = vrot.slane %v2710_v25, 5  ;;  %v2745_v55 = vld [vmem:[%s2676_s9 + $0x30] sm:$0xf]  ;;  %v2750_v60 = vld [vmem:[%s2676_s9 + $0x34] sm:$0x1] }
  0x24   : > { %v231_v50 = vsel %vm2717_vm3, %v226_v41, %v230_v23  ;;  %v281_v51 = vor.u32 %v280_v43, %v277_v42  ;;  %v233_v53 = vshrl.u32 %v2725_v35, 16  ;;  %v236_v54 = vshll.u32 %v2725_v35, 16  ;;  %v2754_v1 = vld [vmem:[%s2676_s9 + $0x38] sm:$0xf]  ;;  %v2757_v8 = vld [vmem:[%s2676_s9 + $0x3c] sm:$0x1] }
  0x25   : > { %v2020_v56 = vcombine.low %v217_v46, %v231_v50  ;;  %v268_v57 = vrot.slane %v267_v47, 4  ;;  %v242_v58 = vshll.u32 %v2731_v45, 16  ;;  %v247_v59 = vshrl.u32 %v2728_v40, 16  ;;  %v532_v20 = vld [vmem:[%s2676_s9] sm:$0xe] }
  0x26   : > { %v282_v61 = vrot.slane %v281_v51, 4  ;;  %v235_v62 = vrot.slane %v233_v53, 4  ;;  %v238_v63 = vrot.slane %v236_v54, 5  ;;  %v250_v0 = vshll.u32 %v2728_v40, 16  ;;  %v533_v28 = vld [vmem:[%s2676_s9 + $0x8] sm:$0xe] }
  0x27   : > { %2292 = vmatprep.mubr.msk.bf16.mxu0 %vm345_vm2, %v2020_v56  ;;  %v273_v9 = vsel %vm2717_vm3, %v268_v57, %v272_v39  ;;  %v244_v10 = vrot.slane %v242_v58, 5  ;;  %v249_v11 = vrot.slane %v247_v59, 4  ;;  %v256_v12 = vshll.u32 %v2740_v52, 16  ;;  %v534_v34 = vld [vmem:[%s2676_s9 + $0x10] sm:$0xe] }
  0x28   : > { %v287_v13 = vsel %vm2717_vm3, %v282_v61, %v286_v44  ;;  %v239_v17 = vor.u32 %v238_v63, %v235_v62  ;;  %v252_v18 = vrot.slane %v250_v0, 5  ;;  %v569_v19 = vrot.slane %v2731_v45, 5  ;;  %v535_v45 = vld [vmem:[%s2676_s9 + $0x18] sm:$0xe]  ;;  %v536_v46 = vld [vmem:[%s2676_s9 + $0x20] sm:$0xe] }
  0x29   : > { %v2022_v22 = vcombine.low %v273_v9, %v287_v13  ;;  %v258_v23 = vrot.slane %v256_v12, 5  ;;  %v573_v26 = vrot.slane %v2740_v52, 5  ;;  %v289_v27 = vshrl.u32 %v2745_v55, 16  ;;  %v537_v53 = vld [vmem:[%s2676_s9 + $0x28] sm:$0xe]  ;;  %v2459_v62 = vld [vmem:[%s3245_s1 + $0x20] sm:$0xff]  }
  0x2a   : > { %v240_v29 = vrot.slane %v239_v17, 4  ;;  %v253_v31 = vor.u32 %v252_v18, %v249_v11  ;;  %v292_v32 = vshll.u32 %v2745_v55, 16  ;;  %v298_v33 = vshll.u32 %v2750_v60, 16  ;;  %v538_v9 = vld [vmem:[%s2676_s9 + $0x30] sm:$0xe] }
  0x2b   : > { %2296 = vmatprep.mubr.msk.bf16.mxu1 %vm345_vm2, %v2022_v22  ;;  %v291_v36 = vrot.slane %v289_v27, 4  ;;  %v303_v37 = vshrl.u32 %v2754_v1, 16  ;;  %v306_v38 = vshll.u32 %v2754_v1, 16  ;;  %v312_v39 = vshll.u32 %v2757_v8, 16  ;;  %v2084_v27 = vld [vmem:[%s2676_s9 + $0x8] sm:$0xf] }
  0x2c   : > { %v245_v41 = vsel %vm2717_vm3, %v240_v29, %v244_v10  ;;  %v254_v42 = vrot.slane %v253_v31, 4  ;;  %v294_v43 = vrot.slane %v292_v32, 5  ;;  %v300_v47 = vrot.slane %v298_v33, 5  ;;  %v539_v10 = vld [vmem:[%s2676_s9 + $0x38] sm:$0xe] }
  0x2d   : > { %v305_v50 = vrot.slane %v303_v37, 4  ;;  %v308_v51 = vrot.slane %v306_v38, 5  ;;  %v2040_v52 = vrot.slane %v532_v20, 9  ;;  %v314_v57 = vrot.slane %v312_v39, 5  ;;  %v2086_v29 = vld [vmem:[%s2676_s9 + $0x10] sm:$0xf] }
  0x2e   : > { %v259_v54 = vsel %vm2717_vm3, %v254_v42, %v258_v23  ;;  %v295_v56 = vor.u32 %v294_v43, %v291_v36  ;;  %v2041_v58 = vrot.slane %v533_v28, 9  ;;  %v2042_v0 = vrot.slane %v534_v34, 9  ;;  %v2832_v28 = vld [vmem:[%s2676_s9 + $0xc] sm:$0x1]  ;;  %v2837_v36 = vld [vmem:[%s2676_s9 + $0x14] sm:$0x1] }
  0x2f   : > { %v2021_v59 = vcombine.low %v245_v41, %v259_v54  ;;  %v309_v61 = vor.u32 %v308_v51, %v305_v50  ;;  %v562_v63 = vsel %vm2781_vm6, %v2040_v52, %v561_v14  ;;  %v2043_v13 = vrot.slane %v535_v45, 9  ;;  %v2461_v45 = vld [vmem:[%s3245_s1 + $0x38] sm:$0xff]  }
  0x30   : > { %v296_v11 = vrot.slane %v295_v56, 4  ;;  %v566_v12 = vsel %vm2781_vm6, %v2041_v58, %v565_v15  ;;  %v2044_v17 = vrot.slane %v536_v46, 9  ;;  %v570_v6 = vsel %vm2781_vm6, %v2042_v0, %v569_v19  ;;  %v2862_v54 = vld [vmem:[%s2676_s9 + $0x1c] sm:$0x1]  ;;  %v2090_v56 = vld [vmem:[%s2676_s9 + $0x20] sm:$0xf] }
  0x31   : > { %2293 = vmatmul.mubr.msk.bf16.vlgmr.msra.gmra.mxu0 %vm345_vm2, %v2021_v59  ;;  %v310_v18 = vrot.slane %v309_v61, 4  ;;  %v2052_v20 = vcombine.low %v562_v63, %v566_v12  ;;  %v2045_v14 = vrot.slane %v537_v53, 9  ;;  %v2030_v15 = vcombine.low %v2679_v4, %v2682_v5  ;;  %v2088_v53 = vld [vmem:[%s2676_s9 + $0x18] sm:$0xf] }
  0x32   : > { %v301_v22 = vsel %vm2717_vm3, %v296_v11, %v300_v47  ;;  %2313 = vmatpush3.bf16.msra.mxu0 %v2671_v3  ;;  %v574_v23 = vsel %vm2781_vm6, %v2043_v13, %v573_v26  ;;  %v2463_v3 = vld [vmem:[%s3245_s1 + $0x48] sm:$0xff]   ;;  %v578_v4 = vsel %vm2781_vm6, %v2044_v17, %v577_v48  ;;  %v2046_v26 = vrot.slane %v538_v9, 9 }
  0x33   : > { %v315_v19 = vsel %vm2717_vm3, %v310_v18, %v314_v57  ;;  %2314 = vmatprep.subr.bf16.mxu0 %v2459_v62  ;;  %2316 = vmatprep.mubr.msk.bf16.mxu0 %vm345_vm2, %v2052_v20  ;;  %v582_v5 = vsel %vm2781_vm6, %v2045_v14, %v581_v49  ;;  %v2053_v32 = vcombine.low %v570_v6, %v574_v23  ;;  %v585_v33 = vrot.slane %v2750_v60, 5  ;;  %v2870_v57 = vld [vmem:[%s2676_s9 + $0x24] sm:$0x1]  ;;  %v2877_v13 = vld [vmem:[%s3245_s1 + $0x68] sm:$0xff]  }
  0x34   : > { %v2023_v31 = vcombine.low %v301_v22, %v315_v19  ;;  %v2047_v34 = vrot.slane %v539_v10, 9  ;;  %v589_v24 = vrot.slane %v2757_v8, 5  ;;  %v853_v37 = vshrl.u32 %v2084_v27, 16  ;;  %v2467_v8 = vld [vmem:[%s3245_s1 + $0x40] sm:$0xff]   ;;  %v2887_v22 = vld [vmem:[%s3245_s1 + $0x58] sm:$0xff]  }
  0x35   : > { %v856_v48 = vshll.u32 %v2084_v27, 16  ;;  %v862_v25 = vshll.u32 %v2832_v28, 16  ;;  %v2054_v49 = vcombine.low %v578_v4, %v582_v5  ;;  %v867_v38 = vshrl.u32 %v2086_v29, 16  ;;  %v2092_v27 = vld [vmem:[%s2676_s9 + $0x28] sm:$0xf] }
  0x36   : > { %2297 = vmatmul.mubr.msk.bf16.vlgmr.msra.gmra.mxu1 %vm345_vm2, %v2023_v31  ;;  %2315 = vmatpush3.bf16.msra.mxu0 %v2459_v62  ;;  %v870_v39 = vshll.u32 %v2086_v29, 16  ;;  %v876_v41 = vshll.u32 %v2837_v36, 16  ;;  %v2032_v60 = vcombine.low %v2701_v16, %v2704_v21  ;;  %v855_v42 = vrot.slane %v853_v37, 4  ;;  %v2892_v4 = vld [vmem:[%s2676_s9 + $0x2c] sm:$0x1] }
  0x37   : > { %2301 = vmatpush3.bf16.msra.mxu1 %v2666_v2  ;;  %2304 = vmatprep.mubr.msk.bf16.mxu1 %vm345_vm2, %v2030_v15  ;;  %v858_v43 = vrot.slane %v856_v48, 5  ;;  %v864_v2 = vrot.slane %v862_v25, 5  ;;  %v869_v46 = vrot.slane %v867_v38, 4  ;;  %v2031_v21 = vcombine.low %v2725_v35, %v2728_v40  ;;  %v2465_v35 = vld [vmem:[%s3245_s1 + $0x30] sm:$0xff]  }
  0x38   : > { %2302 = vmatprep.subr.bf16.mxu1 %v2458_v7  ;;  %2336 = vmatprep.subr.bf16.mxu0 %v2463_v3  ;;  %v872_v47 = vrot.slane %v870_v39, 5  ;;  %v878_v16 = vrot.slane %v876_v41, 5  ;;  %v586_v50 = vsel %vm2781_vm6, %v2046_v26, %v585_v33  ;;  %v590_v51 = vsel %vm2781_vm6, %v2047_v34, %v589_v24  ;;  %v2094_v5 = vld [vmem:[%s2676_s9 + $0x30] sm:$0xf]  ;;  %v2896_v26 = vld [vmem:[%s2676_s9 + $0x34] sm:$0x1] }
  0x39   : > { %2317 = vmatmul.mubr.msk.bf16.vlgmr.msra.gmra.mxu0 %vm345_vm2, %v2053_v32  ;;  %v859_v52 = vor.u32 %v858_v43, %v855_v42  ;;  %v881_v58 = vshrl.u32 %v2088_v53, 16  ;;  %v884_v59 = vshll.u32 %v2088_v53, 16  ;;  %v890_v61 = vshll.u32 %v2862_v54, 16  ;;  %v2468_v41 = vld [vmem:[%s2676_s9 + $0x8] ss:$8 sps:$4 sm:$0xff]  }
  0x3a   : > { %2337 = vmatpush3.bf16.msra.mxu0 %v2463_v3  ;;  %2320 = vmatprep.mubr.msk.bf16.mxu0 %vm345_vm2, %v2054_v49  ;;  %v873_v40 = vor.u32 %v872_v47, %v869_v46  ;;  %v895_v63 = vshrl.u32 %v2090_v56, 16  ;;  %v898_v0 = vshll.u32 %v2090_v56, 16  ;;  %v904_v9 = vshll.u32 %v2870_v57, 16 }
  0x3b   : > { %2303 = vmatpush3.bf16.msra.mxu1 %v2458_v7  ;;  %2338 = vmatprep.subr.bf16.mxu0 %v2467_v8  ;;  %v860_v62 = vrot.slane %v859_v52, 4  ;;  %v883_v11 = vrot.slane %v881_v58, 4  ;;  %v886_v12 = vrot.slane %v884_v59, 5  ;;  %v2055_v17 = vcombine.low %v586_v50, %v590_v51  ;;  %v2475_v52 = vld [vmem:[%s3245_s1 + $0x60] sm:$0xff]  }
  0x3c   : > { %2324 = vmatprep.subr.bf16.mxu1 %v2461_v45  ;;  %v874_v10 = vrot.slane %v873_v40, 4  ;;  %v897_v20 = vrot.slane %v895_v63, 4  ;;  %v900_v6 = vrot.slane %v898_v0, 5  ;;  %v892_v15 = vrot.slane %v890_v61, 5  ;;  %v2470_v63 = vld [vmem:[%s2676_s9 + $0x18] ss:$8 sps:$4 sm:$0xff]  }
  0x3d   : > { %v865_v18 = vsel %vm2717_vm3, %v860_v62, %v864_v2  ;;  %v887_v7 = vor.u32 %v886_v12, %v883_v11  ;;  %v906_v23 = vrot.slane %v904_v9, 5  ;;  %v909_v31 = vshrl.u32 %v2092_v27, 16  ;;  %v2913_v2 = vld [vmem:[%s2676_s9 + $0x3c] sm:$0x1]  ;;  %v2114_v12 = vld [vmem:[%s2676_s9 + $0x8] sm:$0xe] }
  0x3e   : > { %2305 = vmatmul.mubr.msk.bf16.vlgmr.msra.gmra.mxu1 %vm345_vm2, %v2031_v21  ;;  %2339 = vmatpush3.bf16.msra.mxu0 %v2467_v8  ;;  %v879_v14 = vsel %vm2717_vm3, %v874_v10, %v878_v16  ;;  %v901_v3 = vor.u32 %v900_v6, %v897_v20  ;;  %v912_v32 = vshll.u32 %v2092_v27, 16  ;;  %v918_v33 = vshll.u32 %v2892_v4, 16  ;;  %v2098_v16 = vld [vmem:[%s2676_s9 + $0x40] sm:$0xf]  ;;  %v2917_v21 = vld [vmem:[%s2676_s9 + $0x44] sm:$0x1] }
  0x3f   : > { %2325 = vmatpush3.bf16.msra.mxu1 %v2461_v45  ;;  %2308 = vmatprep.mubr.msk.bf16.mxu1 %vm345_vm2, %v2032_v60  ;;  %v2104_v19 = vcombine.low %v865_v18, %v879_v14  ;;  %v888_v29 = vrot.slane %v887_v7, 4  ;;  %v923_v24 = vshrl.u32 %v2094_v5, 16  ;;  %v926_v37 = vshll.u32 %v2094_v5, 16  ;;  %v2096_v45 = vld [vmem:[%s2676_s9 + $0x38] sm:$0xf] }
  0x40   : > { %2326 = vmatprep.subr.bf16.mxu1 %v2465_v35  ;;  %2360 = vmatprep.subr.bf16.mxu0 %v2877_v13  ;;  %v902_v34 = vrot.slane %v901_v3, 4  ;;  %v932_v48 = vshll.u32 %v2896_v26, 16  ;;  %v2033_v25 = vcombine.low %v2745_v55, %v2754_v1  ;;  %v911_v38 = vrot.slane %v909_v31, 4  ;;  %v2115_v6 = vld [vmem:[%s2676_s9 + $0x10] sm:$0xe] }
  0x41   : > { %2321 = vmatmul.mubr.msk.bf16.gmra.mxu0 %vm345_vm2, %v2055_v17  ;;  %v893_v49 = vsel %vm2717_vm3, %v888_v29, %v892_v15  ;;  %v914_v39 = vrot.slane %v912_v32, 5  ;;  %v925_v8 = vrot.slane %v923_v24, 4  ;;  %v928_v42 = vrot.slane %v926_v37, 5  ;;  %v2472_v7 = vld [vmem:[%s2676_s9 + $0x28] ss:$8 sps:$4 sm:$0xff]  }
  0x42   : > { %2340 = vmatprep.mubr.msk.bf16.mxu0 %vm345_vm2, %v2104_v19  ;;  %v907_v60 = vsel %vm2717_vm3, %v902_v34, %v906_v23  ;;  %v920_v55 = vrot.slane %v918_v33, 5  ;;  %v934_v1 = vrot.slane %v932_v48, 5  ;;  %v937_v50 = vshrl.u32 %v2096_v45, 16  ;;  %v2473_v23 = vld [vmem:[%s3245_s1 + $0x50] sm:$0xff]   ;;  %v2116_v33 = vld [vmem:[%s2676_s9 + $0x18] sm:$0xe] }
  0x43   : > { %2327 = vmatpush3.bf16.msra.mxu1 %v2465_v35  ;;  %v915_v43 = vor.u32 %v914_v39, %v911_v38  ;;  %v2105_v46 = vcombine.low %v893_v49, %v907_v60  ;;  %v929_v47 = vor.u32 %v928_v42, %v925_v8  ;;  %v940_v51 = vshll.u32 %v2096_v45, 16  ;;  %v2476_v32 = vld [vmem:[%s2676_s9 + $0x10] ss:$8 sps:$4 sm:$0xff]   ;;  %v2948_v34 = vld [vmem:[%s3245_s1 + $0x88] sm:$0xff]  }
  0x44   : > { %2348 = vmatprep.subr.bf16.mxu1 %v2887_v22  ;;  %v946_v56 = vshll.u32 %v2913_v2, 16  ;;  %v951_v35 = vshrl.u32 %v2098_v16, 16  ;;  %v954_v40 = vshll.u32 %v2098_v16, 16  ;;  %v939_v59 = vrot.slane %v937_v50, 4  ;;  %v2119_v60 = vld [vmem:[%s2676_s9 + $0x30] sm:$0xe] }
  0x45   : > { %v916_v53 = vrot.slane %v915_v43, 4  ;;  %v930_v58 = vrot.slane %v929_v47, 4  ;;  %v942_v61 = vrot.slane %v940_v51, 5  ;;  %v960_v62 = vshll.u32 %v2917_v21, 16  ;;  %v2474_v42 = vld [vmem:[%s2676_s9 + $0x38] ss:$8 sps:$4 sm:$0xff]  }
  0x46   : > { %2309 = vmatmul.mubr.msk.bf16.gmra.mxu1 %vm345_vm2, %v2033_v25  ;;  %v948_v9 = vrot.slane %v946_v56, 5  ;;  %v953_v10 = vrot.slane %v951_v35, 4  ;;  %v956_v11 = vrot.slane %v954_v40, 5  ;;  %v2122_v14 = vrot.slane %v2114_v12, 9  ;;  %v2478_v47 = vld [vmem:[%s2676_s9 + $0x20] ss:$8 sps:$4 sm:$0xff]  }
  0x47   : > { %2328 = vmatprep.mubr.msk.bf16.mxu1 %vm345_vm2, %v2468_v41  ;;  %v921_v0 = vsel %vm2717_vm3, %v916_v53, %v920_v55  ;;  %v935_v17 = vsel %vm2717_vm3, %v930_v58, %v934_v1  ;;  %v943_v18 = vor.u32 %v942_v61, %v939_v59  ;;  %v962_v20 = vrot.slane %v960_v62, 5  ;;  %v2118_v41 = vld [vmem:[%s2676_s9 + $0x28] sm:$0xe]  ;;  %v2480_v53 = vld [vmem:[%s2676_s9 + $0x30] ss:$8 sps:$4 sm:$0xff]  }
  0x48   : > { %v2106_v15 = vcombine.low %v921_v0, %v935_v17  ;;  %v957_v27 = vor.u32 %v956_v11, %v953_v10  ;;  %v1104_v19 = vrot.slane %v2832_v28, 5  ;;  %v2123_v3 = vrot.slane %v2115_v6, 9  ;;  %v2166_v40 = vld [vmem:[%s2676_s9 + $0x10] sm:$0xf]  ;;  %v2168_v61 = vld [vmem:[%s2676_s9 + $0x18] sm:$0xf] }
  0x49   : > { %2341 = vmatmul.mubr.msk.bf16.vlgmr.msra.gmra.mxu0 %vm345_vm2, %v2105_v46  ;;  %v944_v5 = vrot.slane %v943_v18, 4  ;;  %v1108_v29 = vrot.slane %v2837_v36, 5  ;;  %v2124_v24 = vrot.slane %v2116_v33, 9  ;;  %v1112_v37 = vrot.slane %v2862_v54, 5  ;;  %v2121_v46 = vld [vmem:[%s2676_s9 + $0x40] sm:$0xe] }
  0x4a   : > { %2361 = vmatpush3.bf16.msra.mxu0 %v2877_v13  ;;  %2344 = vmatprep.mubr.msk.bf16.mxu0 %vm345_vm2, %v2106_v15  ;;  %v958_v31 = vrot.slane %v957_v27, 4  ;;  %v2117_v13 = vld [vmem:[%s2676_s9 + $0x20] sm:$0xe]  ;;  %v1116_v25 = vrot.slane %v2870_v57, 5  ;;  %v1120_v49 = vrot.slane %v2892_v4, 5  ;;  %v1105_v54 = vsel %vm2781_vm6, %v2122_v14, %v1104_v19  ;;  %v2969_v57 = vld [vmem:[%s3245_s1 + $0x78] sm:$0xff]  }
  0x4b   : > { %2362 = vmatprep.subr.bf16.mxu0 %v2475_v52  ;;  %v949_v28 = vsel %vm2717_vm3, %v944_v5, %v948_v9  ;;  %v2125_v48 = vrot.slane %v2117_v13, 9  ;;  %v1109_v39 = vsel %vm2781_vm6, %v2123_v3, %v1108_v29  ;;  %v2127_v4 = vrot.slane %v2119_v60, 9  ;;  %v2169_v62 = vld [vmem:[%s2676_s9 + $0x1c] sm:$0x1]  ;;  %v2483_v0 = vld [vmem:[%s3245_s1 + $0x80] sm:$0xff]  }
  0x4c   : > { %v963_v36 = vsel %vm2717_vm3, %v958_v31, %v962_v20  ;;  %v1124_v8 = vrot.slane %v2896_v26, 5  ;;  %v2134_v43 = vcombine.low %v1105_v54, %v1109_v39  ;;  %v2978_v55 = vsel %vm2781_vm6, %v2124_v24, %v1112_v37  ;;  %v2120_v26 = vld [vmem:[%s2676_s9 + $0x38] sm:$0xe]  ;;  %v2196_v12 = vld [vmem:[%s2676_s9 + $0x10] sm:$0xe] }
  0x4d   : > { %v2107_v38 = vcombine.low %v949_v28, %v963_v36  ;;  %v2982_v1 = vsel %vm2781_vm6, %v2125_v48, %v1116_v25  ;;  %v2128_v50 = vrot.slane %v2120_v26, 9  ;;  %v1128_v51 = vrot.slane %v2913_v2, 5  ;;  %v2197_v6 = vld [vmem:[%s2676_s9 + $0x18] sm:$0xe]  ;;  %v2170_v19 = vld [vmem:[%s2676_s9 + $0x20] sm:$0xf] }
  0x4e   : > { %2329 = vmatmul.mubr.msk.bf16.vlgmr.msra.gmra.mxu1 %vm345_vm2, %v2470_v63  ;;  %2363 = vmatpush3.bf16.msra.mxu0 %v2475_v52  ;;  %v2993_v16 = vsel %vm2781_vm6, %v2127_v4, %v1124_v8  ;;  %v2129_v52 = vrot.slane %v2121_v46, 9  ;;  %v1132_v56 = vrot.slane %v2917_v21, 5  ;;  %v2135_v58 = vcombine.low %v2978_v55, %v2982_v1  ;;  %v2167_v21 = vld [vmem:[%s2676_s9 + $0x14] sm:$0x1]  ;;  %v2482_v33 = vld [vmem:[%s2676_s9 + $0x40] ss:$8 sps:$4 sm:$0xff]  }
  0x4f   : > { %2349 = vmatpush3.bf16.msra.mxu1 %v2887_v22  ;;  %2332 = vmatprep.mubr.msk.bf16.mxu1 %vm345_vm2, %v2472_v7  ;;  %v2126_v22 = vrot.slane %v2118_v41, 9  ;;  %v3001_v35 = vsel %vm2781_vm6, %v2128_v50, %v1128_v51  ;;  %v1396_v9 = vshrl.u32 %v2166_v40, 16  ;;  %v1399_v10 = vshll.u32 %v2166_v40, 16  ;;  %v2172_v37 = vld [vmem:[%s2676_s9 + $0x28] sm:$0xf] }
  0x50   : > { %2350 = vmatprep.subr.bf16.mxu1 %v2473_v23  ;;  %2384 = vmatprep.subr.bf16.mxu0 %v2948_v34  ;;  %v3011_v59 = vsel %vm2781_vm6, %v2129_v52, %v1132_v56  ;;  %v1405_v11 = vshll.u32 %v2167_v21, 16  ;;  %v1410_v17 = vshrl.u32 %v2168_v61, 16  ;;  %v1413_v18 = vshll.u32 %v2168_v61, 16  ;;  %v2173_v25 = vld [vmem:[%s2676_s9 + $0x2c] sm:$0x1] }
  0x51   : > { %2345 = vmatmul.mubr.msk.bf16.gmra.mxu0 %vm345_vm2, %v2107_v38  ;;  %v2986_v45 = vsel %vm2781_vm6, %v2126_v22, %v1120_v49  ;;  %v2137_v63 = vcombine.low %v3001_v35, %v3011_v59  ;;  %v1419_v20 = vshll.u32 %v2169_v62, 16  ;;  %v2204_v14 = vrot.slane %v2196_v12, 9  ;;  %v2198_v4 = vld [vmem:[%s2676_s9 + $0x20] sm:$0xe]  ;;  %v2199_v1 = vld [vmem:[%s2676_s9 + $0x28] sm:$0xe] }
  0x52   : > { %2364 = vmatprep.mubr.msk.bf16.mxu0 %vm345_vm2, %v2476_v32  ;;  %v2136_v2 = vcombine.low %v2986_v45, %v2993_v16  ;;  %v1398_v7 = vrot.slane %v1396_v9, 4  ;;  %v1401_v15 = vrot.slane %v1399_v10, 5  ;;  %v1647_v27 = vrot.slane %v2167_v21, 5  ;;  %v2171_v32 = vld [vmem:[%s2676_s9 + $0x24] sm:$0x1] }
  0x53   : > { %2351 = vmatpush3.bf16.msra.mxu1 %v2473_v23  ;;  %v1407_v23 = vrot.slane %v1405_v11, 5  ;;  %v1412_v3 = vrot.slane %v1410_v17, 4  ;;  %v1415_v5 = vrot.slane %v1413_v18, 5  ;;  %v1421_v29 = vrot.slane %v1419_v20, 5  ;;  %v2174_v16 = vld [vmem:[%s2676_s9 + $0x30] sm:$0xf] }
  0x54   : > { %2372 = vmatprep.subr.bf16.mxu1 %v2969_v57  ;;  %v2205_v31 = vrot.slane %v2197_v6, 9  ;;  %v1402_v13 = vor.u32 %v1401_v15, %v1398_v7  ;;  %v1648_v28 = vsel %vm2781_vm6, %v2204_v14, %v1647_v27  ;;  %v1651_v24 = vrot.slane %v2169_v62, 5  ;;  %v2175_v56 = vld [vmem:[%s2676_s9 + $0x34] sm:$0x1]  ;;  %v2176_v40 = vld [vmem:[%s2676_s9 + $0x38] sm:$0xf] }
  0x55   : > { %v1424_v36 = vshrl.u32 %v2170_v19, 16  ;;  %v1416_v48 = vor.u32 %v1415_v5, %v1412_v3  ;;  %v1427_v49 = vshll.u32 %v2170_v19, 16  ;;  %v1433_v38 = vshll.u32 %v2171_v32, 16  ;;  %v2177_v11 = vld [vmem:[%s2676_s9 + $0x3c] sm:$0x1] }
  0x56   : > { %2333 = vmatmul.mubr.msk.bf16.gmra.mxu1 %vm345_vm2, %v2474_v42  ;;  %v1438_v54 = vshrl.u32 %v2172_v37, 16  ;;  %v1403_v39 = vrot.slane %v1402_v13, 4  ;;  %v1652_v41 = vsel %vm2781_vm6, %v2205_v31, %v1651_v24  ;;  %v1441_v22 = vshll.u32 %v2172_v37, 16  ;;  %v2200_v15 = vld [vmem:[%s2676_s9 + $0x30] sm:$0xe] }
  0x57   : > { %2352 = vmatprep.mubr.msk.bf16.mxu1 %vm345_vm2, %v2134_v43  ;;  %v1426_v60 = vrot.slane %v1424_v36, 4  ;;  %v1417_v8 = vrot.slane %v1416_v48, 4  ;;  %v2216_v42 = vcombine.low %v1648_v28, %v1652_v41  ;;  %v1429_v43 = vrot.slane %v1427_v49, 5  ;;  %v2179_v28 = vld [vmem:[%s2676_s9 + $0x44] sm:$0x1] }
  0x58   : > { %v1435_v55 = vrot.slane %v1433_v38, 5  ;;  %v1408_v45 = vsel %vm2717_vm3, %v1403_v39, %v1407_v23  ;;  %v1440_v26 = vrot.slane %v1438_v54, 4  ;;  %v1443_v46 = vrot.slane %v1441_v22, 5  ;;  %v2201_v23 = vld [vmem:[%s2676_s9 + $0x38] sm:$0xe] }
  0x59   : > { %2365 = vmatmul.mubr.msk.bf16.vlgmr.msra.gmra.mxu0 %vm345_vm2, %v2478_v47  ;;  %v1447_v47 = vshll.u32 %v2173_v25, 16  ;;  %v1422_v50 = vsel %vm2717_vm3, %v1417_v8, %v1421_v29  ;;  %v1430_v51 = vor.u32 %v1429_v43, %v1426_v60  ;;  %v2206_v52 = vrot.slane %v2198_v4, 9  ;;  %v2178_v29 = vld [vmem:[%s2676_s9 + $0x40] sm:$0xf]  ;;  %v2180_v48 = vld [vmem:[%s2676_s9 + $0x48] sm:$0xf] }
  0x5a   : > { %2385 = vmatpush3.bf16.msra.mxu0 %v2948_v34  ;;  %2368 = vmatprep.mubr.msk.bf16.mxu0 %vm345_vm2, %v2480_v53  ;;  %v2481_v34 = vld [vmem:[%s3245_s1 + $0x70] sm:$0xff]   ;;  %v1655_v53 = vrot.slane %v2171_v32, 5  ;;  %v2207_v21 = vrot.slane %v2199_v1, 9  ;;  %v1452_v9 = vshrl.u32 %v2174_v16, 16  ;;  %v1455_v12 = vshll.u32 %v2174_v16, 16 }
  0x5b   : > { %2386 = vmatprep.subr.bf16.mxu0 %v2483_v0  ;;  %v1431_v61 = vrot.slane %v1430_v51, 4  ;;  %v1461_v17 = vshll.u32 %v2175_v56, 16  ;;  %v1466_v18 = vshrl.u32 %v2176_v40, 16  ;;  %v1469_v7 = vshll.u32 %v2176_v40, 16  ;;  %v2181_v54 = vld [vmem:[%s2676_s9 + $0x4c] sm:$0x1] }
  0x5c   : > { %v1656_v62 = vsel %vm2781_vm6, %v2206_v52, %v1655_v53  ;;  %v1454_v14 = vrot.slane %v1452_v9, 4  ;;  %v1457_v3 = vrot.slane %v1455_v12, 5  ;;  %v1475_v13 = vshll.u32 %v2177_v11, 16 }
  0x5d   : > { %v1436_v20 = vsel %vm2717_vm3, %v1431_v61, %v1435_v55  ;;  %v1463_v5 = vrot.slane %v1461_v17, 5  ;;  %v1468_v32 = vrot.slane %v1466_v18, 4  ;;  %v2208_v37 = vrot.slane %v2200_v15, 9 }
  0x5e   : > { %2353 = vmatmul.mubr.msk.bf16.vlgmr.msra.gmra.mxu1 %vm345_vm2, %v2135_v58  ;;  %2387 = vmatpush3.bf16.msra.mxu0 %v2483_v0  ;;  %v1444_v58 = vor.u32 %v1443_v46, %v1440_v26  ;;  %v1659_v0 = vrot.slane %v2173_v25, 5  ;;  %v1458_v24 = vor.u32 %v1457_v3, %v1454_v14  ;;  %v1663_v36 = vrot.slane %v2175_v56, 5 }
  0x5f   : > { %2373 = vmatpush3.bf16.msra.mxu1 %v2969_v57  ;;  %2356 = vmatprep.mubr.msk.bf16.mxu1 %vm345_vm2, %v2136_v2  ;;  %v2186_v57 = vcombine.low %v1408_v45, %v1422_v50  ;;  %v1449_v2 = vrot.slane %v1447_v47, 5  ;;  %v1477_v49 = vrot.slane %v1475_v13, 5  ;;  %v1667_v38 = vrot.slane %v2177_v11, 5  ;;  %v2203_v45 = vld [vmem:[%s2676_s9 + $0x48] sm:$0xe] }
  0x60   : > { %2374 = vmatprep.subr.bf16.mxu1 %v2481_v34  ;;  %v1445_v10 = vrot.slane %v1444_v58, 4  ;;  %v1660_v6 = vsel %vm2781_vm6, %v2207_v21, %v1659_v0  ;;  %v1480_v35 = vshrl.u32 %v2178_v29, 16  ;;  %v1459_v59 = vrot.slane %v1458_v24, 4 }
  0x61   : > { %2369 = vmatmul.mubr.msk.bf16.gmra.mxu0 %vm345_vm2, %v2482_v33  ;;  %v2217_v19 = vcombine.low %v1656_v62, %v1660_v6  ;;  %v1471_v33 = vrot.slane %v1469_v7, 5  ;;  %v1483_v39 = vshll.u32 %v2178_v29, 16  ;;  %v1489_v41 = vshll.u32 %v2179_v28, 16 }
  0x62   : > { %2388 = vmatprep.mubr.msk.bf16.mxu0 %vm345_vm2, %v2216_v42  ;;  %v1450_v27 = vsel %vm2717_vm3, %v1445_v10, %v1449_v2  ;;  %v1482_v4 = vrot.slane %v1480_v35, 4  ;;  %v1494_v8 = vshrl.u32 %v2180_v48, 16  ;;  %v2202_v42 = vld [vmem:[%s2676_s9 + $0x40] sm:$0xe]  ;;  %v1464_v43 = vsel %vm2717_vm3, %v1459_v59, %v1463_v5  ;;  %s3127_s9 = sand.u32 1, %s2566_s13  }
  0x63   : > { %2375 = vmatpush3.bf16.msra.mxu1 %v2481_v34  ;;  %v2187_v31 = vcombine.low %v1436_v20, %v1450_v27  ;;  %v2209_v34 = vrot.slane %v2201_v23, 9  ;;  %v1472_v25 = vor.u32 %v1471_v33, %v1468_v32  ;;  %v1485_v1 = vrot.slane %v1483_v39, 5  ;;  %s2013_s30 = sshll.u32 %s3127_s9, 6  ;;  %s1884_s24 = scalar_lea.sflag [#allocation3], %s3127_s9 }
  0x64   : > { %v1496_v46 = vrot.slane %v1494_v8, 4  ;;  %v1497_v47 = vshll.u32 %v2180_v48, 16  ;;  %v1503_v16 = vshll.u32 %v2181_v54, 16  ;;  %v2210_v52 = vrot.slane %v2202_v42, 9  ;;  %s3136_s4 = scalar_lea.vmem [#allocation2], %s2013_s30 }
  0x65   : > { %v1473_v60 = vrot.slane %v1472_v25, 4  ;;  %v1668_v22 = vsel %vm2781_vm6, %v2209_v34, %v1667_v38  ;;  %v1486_v51 = vor.u32 %v1485_v1, %v1482_v4  ;;  %v1671_v53 = vrot.slane %v2179_v28, 5  ;;  %s1902_s8 = sshll.u32 %s3136_s4, 4  ;;  %s3184_s8 = int_to_ptr.vmem [resolvable:$true] %s1902_s8 }
  0x66   : > { %2357 = vmatmul.mubr.msk.bf16.gmra.mxu1 %vm345_vm2, %v2137_v63  ;;  %v1664_v63 = vsel %vm2781_vm6, %v2208_v37, %v1663_v36  ;;  %v1491_v56 = vrot.slane %v1489_v41, 5  ;;  %v1499_v40 = vrot.slane %v1497_v47, 5  ;;  %v1675_v58 = vrot.slane %v2181_v54, 5  ;;  %s2484_s25 = scalar_lea.vmem %s3184_s8, 1024  ;;  %p2491_p0 = scmp.lt.s32.totalorder %s3184_s8, %s2489_s27 }
  0x67   : > { %2376 = vmatprep.mubr.msk.bf16.mxu1 %vm345_vm2, %v2186_v57  ;;  %v2218_v55 = vcombine.low %v1664_v63, %v1668_v22  ;;  %v1478_v26 = vsel %vm2717_vm3, %v1473_v60, %v1477_v49  ;;  %v2211_v57 = vrot.slane %v2203_v45, 9  ;;  %v1487_v2 = vrot.slane %v1486_v51, 4  ;;  %p2485_p11 = scmp.ne.s32.totalorder %s3184_s8, %s2484_s25  ;;  %p2492_p1 = scmp.lt.s32.totalorder %s2490_s28, %s2484_s25 }
  0x68   : > { %v2188_v50 = vcombine.low %v1464_v43, %v1478_v26  ;;  %v1672_v21 = vsel %vm2781_vm6, %v2210_v52, %v1671_v53  ;;  %v1500_v61 = vor.u32 %v1499_v40, %v1496_v46  ;;  %v1505_v62 = vrot.slane %v1503_v16, 5 }
  0x69   : > { %2389 = vmatmul.mubr.msk.bf16.vlgmr.msra.gmra.mxu0 %vm345_vm2, %v2217_v19  ;;  %v1676_v0 = vsel %vm2781_vm6, %v2211_v57, %v1675_v58  ;;  %v1492_v10 = vsel %vm2717_vm3, %v1487_v2, %v1491_v56  ;;  %p2486_p12 = pnand %p2485_p11, %p2645_p5  ;;  %p2493_p2 = por %p2492_p1, %p2491_p0 }
  0x6a   : > { %2392 = vmatprep.mubr.msk.bf16.mxu0 %vm345_vm2, %v2218_v55  ;;  %v2219_v9 = vcombine.low %v1672_v21, %v1676_v0  ;;  %v1501_v11 = vrot.slane %v1500_v61, 4 }
  0x6b   : > { %p2487_p13 = pneg %p2486_p12 }
  0x6c   : > { %v1506_v12 = vsel %vm2717_vm3, %v1501_v11, %v1505_v62 }
  0x6d   : > { %v2189_v17 = vcombine.low %v1492_v10, %v1506_v12  ;;  %p2494_p3 = pnand %p2493_p2, %p2487_p13 }
  0x6e   : > { %2377 = vmatmul.mubr.msk.bf16.vlgmr.msra.gmra.mxu1 %vm345_vm2, %v2187_v31 }
  0x6f   : > { %2380 = vmatprep.mubr.msk.bf16.mxu1 %vm345_vm2, %v2188_v50 }
  0x71   : > { %2393 = vmatmul.mubr.msk.bf16.gmra.mxu0 %vm345_vm2, %v2219_v9 }
  0x76   : > { %2381 = vmatmul.mubr.msk.bf16.gmra.mxu1 %vm345_vm2, %v2189_v17 }
  0xf1   : > { %v2294_v18 = vpop.f32.mrf.mxu0 }
  0xf3   : > { %v392_v20 = vpop.f32.mrf.mxu0 }
  0xf5   : > { %v2295_v6 = vpop.f32.mrf.mxu0 }
  0xf6   : > { %v2298_v14 = vpop.f32.mrf.mxu1 }
  0xf7   : > { %v395_v7 = vpop.f32.mrf.mxu0 }
  0xf8   : > { %v408_v44 = vpop.f32.mrf.mxu1 }
  0xf9   : > { %v2318_v15 = vpop.f32.mrf.mxu0 }
  0xfa   : > { %v3097_v23 = vpop.f32.mrf.mxu1 }
  0xfb   : > { %v666_v27 = vpop.f32.mrf.mxu0 }
  0xfc   : > { %v3099_v19 = vpop.f32.mrf.mxu1 }
  0xfd   : > { %v2319_v3 = vpop.f32.mrf.mxu0 }
  0xfe   : > { %v2306_v5 = vpop.f32.mrf.mxu1 }
  0xff   : > { %v669_v29 = vpop.f32.mrf.mxu0  ;;  %v510_v26 = vadd.f32 %v2306_v5, %v2294_v18 }
 0x100   : > { %v501_v30 = vpop.f32.mrf.mxu1 }
 0x101   : > { %v2322_v31 = vpop.f32.mrf.mxu0  ;;  %v502_v16 = vadd.f32 %v501_v30, %v392_v20  ;;  %v699_v52 = vadd.f32 %v2318_v15, %v510_v26 }
 0x102   : > { %v2307_v32 = vpop.f32.mrf.mxu1 }
 0x103   : > { %v3101_v33 = vpop.f32.mrf.mxu0  ;;  %v513_v53 = vadd.f32 %v2307_v32, %v2295_v6  ;;  %v697_v57 = vadd.f32 %v666_v27, %v502_v16 }
 0x104   : > { %v504_v13 = vpop.f32.mrf.mxu1 }
 0x105   : > { %v3103_v28 = vpop.f32.mrf.mxu0  ;;  %v505_v21 = vadd.f32 %v504_v13, %v395_v7  ;;  %v700_v62 = vadd.f32 %v2319_v3, %v513_v53 }
 0x106   : > { %v2310_v24 = vpop.f32.mrf.mxu1 }
 0x107   : > { %v3105_v37 = vpop.f32.mrf.mxu0  ;;  %v526_v10 = vadd.f32 %v2310_v24, %v2298_v14  ;;  %v698_v20 = vadd.f32 %v669_v29, %v505_v21 }
 0x108   : > { %v517_v36 = vpop.f32.mrf.mxu1 }
 0x109   : > { %v2342_v34 = vpop.f32.mrf.mxu0  ;;  %v518_v6 = vadd.f32 %v517_v36, %v408_v44  ;;  %v703_v32 = vadd.f32 %v2322_v31, %v526_v10 }
 0x10a   : > { %v2311_v48 = vpop.f32.mrf.mxu1 }
 0x10b   : > { %v1039_v25 = vpop.f32.mrf.mxu0  ;;  %v529_v7 = vadd.f32 %v2311_v48, %v3097_v23  ;;  %v701_v29 = vadd.f32 %v3101_v33, %v518_v6 }
 0x10c   : > { %v520_v49 = vpop.f32.mrf.mxu1 }
 0x10d   : > { %v2343_v38 = vpop.f32.mrf.mxu0  ;;  %v521_v14 = vadd.f32 %v520_v49, %v3099_v19  ;;  %v704_v23 = vadd.f32 %v3103_v28, %v529_v7 }
 0x10e   : > { %v2330_v35 = vpop.f32.mrf.mxu1 }
 0x10f   : > { %v1042_v59 = vpop.f32.mrf.mxu0  ;;  %v830_v58 = vadd.f32 %v2330_v35, %v699_v52  ;;  %v702_v26 = vadd.f32 %v3105_v37, %v521_v14 }
 0x110   : > { %v797_v63 = vpop.f32.mrf.mxu1 }
 0x111   : > { %v3107_v54 = vpop.f32.mrf.mxu0  ;;  %v828_v0 = vadd.f32 %v797_v63, %v697_v57  ;;  %v1072_v12 = vadd.f32 %v2342_v34, %v830_v58 }
 0x112   : > { %v2331_v39 = vpop.f32.mrf.mxu1 }
 0x113   : > { %v3109_v41 = vpop.f32.mrf.mxu0  ;;  %v831_v17 = vadd.f32 %v2331_v39, %v700_v62  ;;  %v1070_v27 = vadd.f32 %v1039_v25, %v828_v0 }
 0x114   : > { %v800_v60 = vpop.f32.mrf.mxu1 }
 0x115   : > { %v3111_v22 = vpop.f32.mrf.mxu0  ;;  %v829_v3 = vadd.f32 %v800_v60, %v698_v20  ;;  %v1073_v24 = vadd.f32 %v2343_v38, %v831_v17 }
 0x116   : > { %v2334_v4 = vpop.f32.mrf.mxu1 }
 0x117   : > { %v3113_v8 = vpop.f32.mrf.mxu0  ;;  %v834_v44 = vadd.f32 %v2334_v4, %v703_v32  ;;  %v1071_v48 = vadd.f32 %v1042_v59, %v829_v3 }
 0x118   : > { %v813_v42 = vpop.f32.mrf.mxu1 }
 0x119   : > { %v2366_v43 = vpop.f32.mrf.mxu0  ;;  %v832_v39 = vadd.f32 %v813_v42, %v701_v29  ;;  %v1076_v38 = vadd.f32 %v3107_v54, %v834_v44 }
 0x11a   : > { %v2335_v55 = vpop.f32.mrf.mxu1 }
 0x11b   : > { %v1340_v1 = vpop.f32.mrf.mxu0  ;;  %v835_v16 = vadd.f32 %v2335_v55, %v704_v23  ;;  %v1074_v28 = vadd.f32 %v3109_v41, %v832_v39 }
 0x11c   : > { %v816_v45 = vpop.f32.mrf.mxu1 }
 0x11d   : > { %v2367_v46 = vpop.f32.mrf.mxu0 }
 0x11e   : > { %v2354_v47 = vpop.f32.mrf.mxu1 }
 0x11f   : > { %v3115_v50 = vpop.f32.mrf.mxu0  ;;  %v1242_v5 = vadd.f32 %v2354_v47, %v1072_v12 }
 0x120   : > { %v1209_v51 = vpop.f32.mrf.mxu1 }
 0x121   : > { %v3117_v56 = vpop.f32.mrf.mxu0  ;;  %v1240_v34 = vadd.f32 %v1209_v51, %v1070_v27  ;;  %v1373_v25 = vadd.f32 %v2366_v43, %v1242_v5  ;;  %v833_v43 = vadd.f32 %v816_v45, %v702_v26 }
 0x122   : > { %v2355_v40 = vpop.f32.mrf.mxu1 }
 0x123   : > { %v3119_v2 = vpop.f32.mrf.mxu0  ;;  %v1243_v63 = vadd.f32 %v2355_v40, %v1073_v24  ;;  %v1371_v47 = vadd.f32 %v1340_v1, %v1240_v34  ;;  %v1077_v40 = vadd.f32 %v3111_v22, %v835_v16  ;;  %v1075_v41 = vadd.f32 %v3113_v8, %v833_v43 }
 0x124   : > { %v1212_v61 = vpop.f32.mrf.mxu1 }
 0x125   : > { %v3121_v9 = vpop.f32.mrf.mxu0  ;;  %v1241_v33 = vadd.f32 %v1212_v61, %v1071_v48  ;;  %v1374_v51 = vadd.f32 %v2367_v46, %v1243_v63 }
 0x126   : > { %v2358_v11 = vpop.f32.mrf.mxu1 }
 0x127   : > { %v3123_v18 = vpop.f32.mrf.mxu0  ;;  %v1246_v59 = vadd.f32 %v2358_v11, %v1076_v38  ;;  %v1372_v1 = vadd.f32 %v3115_v50, %v1241_v33 }
 0x128   : > { %v1225_v15 = vpop.f32.mrf.mxu1 }
 0x129   : > { %v2390_v30 = vpop.f32.mrf.mxu0  ;;  %v1244_v45 = vadd.f32 %v1225_v15, %v1074_v28  ;;  %v1377_v58 = vadd.f32 %v3117_v56, %v1246_v59 }
 0x12a   : > { %v2359_v13 = vpop.f32.mrf.mxu1 }
 0x12b   : > { %v1752_v35 = vpop.f32.mrf.mxu0  ;;  %v1247_v61 = vadd.f32 %v2359_v13, %v1077_v40  ;;  %v1375_v50 = vadd.f32 %v3119_v2, %v1244_v45 }
 0x12c   : > { %v1228_v36 = vpop.f32.mrf.mxu1 }
 0x12d   : > { %v2391_v31 = vpop.f32.mrf.mxu0  ;;  %v1245_v62 = vadd.f32 %v1228_v36, %v1075_v41  ;;  %v1378_v5 = vadd.f32 %v3121_v9, %v1247_v61 }
 0x12e   : > { %v2378_v60 = vpop.f32.mrf.mxu1 }
 0x12f   : > { %v1615_v19 = vadd.f32 %v2378_v60, %v1373_v25  ;;  %v1755_v49 = vpop.f32.mrf.mxu0 }
 0x130   : > { %v1582_v4 = vpop.f32.mrf.mxu1 }
 0x131   : > { %v1785_v52 = vadd.f32 %v2390_v30, %v1615_v19  ;;  %v1613_v53 = vadd.f32 %v1582_v4, %v1371_v47  ;;  %v2394_v55 = vpop.f32.mrf.mxu0  ;;  %v1376_v30 = vadd.f32 %v3123_v18, %v1245_v62 }
 0x132   : > { %v2379_v42 = vpop.f32.mrf.mxu1 }
 0x133   : > { %1877 = vst.msk [vmem:[%s3136_s4 + $0x10] sm:$0xff] %vm1791_vm7, %v1785_v52  ;;  %v1783_v37 = vadd.f32 %v1752_v35, %v1613_v53  ;;  %v1616_v54 = vadd.f32 %v2379_v42, %v1374_v51  ;;  %v1768_v10 = vpop.f32.mrf.mxu0  ;;  %v1815_v17 = vmul.f32 %v1785_v52, %v1785_v52  ;;  %v1795_v2 = vsel %vm1791_vm7, %v1785_v52, 0.0 }
 0x134   : > { %v1585_v46 = vpop.f32.mrf.mxu1 }
 0x135   : > { %1875 = vst.msk [vmem:[%s3136_s4] sm:$0xff] %vm1791_vm7, %v1783_v37  ;;  %v1786_v57 = vadd.f32 %v2391_v31, %v1616_v54  ;;  %v1614_v21 = vadd.f32 %v1585_v46, %v1372_v1  ;;  %v1813_v11 = vmul.f32 %v1783_v37, %v1783_v37  ;;  %v1792_v8 = vsel %vm1791_vm7, %v1783_v37, 0.0  ;;  %v2395_v3 = vpop.f32.mrf.mxu0 }
 0x136   : > { %v2382_v0 = vpop.f32.mrf.mxu1  ;;  %v1824_v18 = vsel %vm1791_vm7, %v1815_v17, 0.0 }
 0x137   : > { %1878 = vst.msk [vmem:[%s3136_s4 + $0x18] sm:$0xff] %vm1791_vm7, %v1786_v57  ;;  %v1784_v12 = vadd.f32 %v1755_v49, %v1614_v21  ;;  %v1619_v22 = vadd.f32 %v2382_v0, %v1377_v58  ;;  %v1821_v13 = vsel %vm1791_vm7, %v1813_v11, 0.0  ;;  %v1816_v14 = vmul.f32 %v1786_v57, %v1786_v57  ;;  %v1771_v39 = vpop.f32.mrf.mxu0 }
 0x138   : > { %v1598_v20 = vpop.f32.mrf.mxu1  ;;  %v1797_v36 = vsel %vm1791_vm7, %v1786_v57, 0.0 }
 0x139   : > { %v1793_v56 = vsel %vm1791_vm7, %v1784_v12, 0.0  ;;  %v1814_v6 = vmul.f32 %v1784_v12, %v1784_v12  ;;  %1876 = vst.msk [vmem:[%s3136_s4 + $0x8] sm:$0xff] %vm1791_vm7, %v1784_v12  ;;  %v1789_v15 = vadd.f32 %v2394_v55, %v1619_v22  ;;  %v1617_v27 = vadd.f32 %v1598_v20, %v1375_v50 }
 0x13a   : > { %v1794_v32 = vadd.f32 %v1793_v56, %v1792_v8  ;;  %v2383_v7 = vpop.f32.mrf.mxu1  ;;  %v1826_v60 = vsel %vm1791_vm7, %v1816_v14, 0.0 }
 0x13b   : > { %v1822_v24 = vsel %vm1791_vm7, %v1814_v6, 0.0  ;;  %1881 = vst.msk [vmem:[%s3136_s4 + $0x30] sm:$0xff] %vm1791_vm7, %v1789_v15  ;;  %v1787_v34 = vadd.f32 %v1768_v10, %v1617_v27  ;;  %v1620_v44 = vadd.f32 %v2383_v7, %v1378_v5  ;;  %v1819_v38 = vmul.f32 %v1789_v15, %v1789_v15 }
 0x13c   : > { %v1796_v35 = vadd.f32 %v1795_v2, %v1794_v32  ;;  %v1823_v29 = vadd.f32 %v1822_v24, %v1821_v13  ;;  %v1601_v9 = vpop.f32.mrf.mxu1  ;;  %v1803_v52 = vsel %vm1791_vm7, %v1789_v15, 0.0 }
 0x13d   : > { %v1817_v25 = vmul.f32 %v1787_v34, %v1787_v34  ;;  %1879 = vst.msk [vmem:[%s3136_s4 + $0x20] sm:$0xff] %vm1791_vm7, %v1787_v34  ;;  %v1618_v63 = vadd.f32 %v1601_v9, %v1376_v30  ;;  %v1790_v48 = vadd.f32 %v2395_v3, %v1620_v44  ;;  %v1799_v26 = vsel %vm1791_vm7, %v1787_v34, 0.0 }
 0x13e   : > { %v1825_v31 = vadd.f32 %v1824_v18, %v1823_v29  ;;  %v1798_v23 = vadd.f32 %v1797_v36, %v1796_v35  ;;  %v1832_v37 = vsel %vm1791_vm7, %v1819_v38, 0.0 }
 0x13f   : > { %v1788_v47 = vadd.f32 %v1771_v39, %v1618_v63  ;;  %1882 = vst.msk [vmem:[%s3136_s4 + $0x38] sm:$0xff] %vm1791_vm7, %v1790_v48  ;;  %v1828_v16 = vsel %vm1791_vm7, %v1817_v25, 0.0  ;;  %v1820_v53 = vmul.f32 %v1790_v48, %v1790_v48  ;;  %v1805_v54 = vsel %vm1791_vm7, %v1790_v48, 0.0 }
 0x140   : > { %v1800_v19 = vadd.f32 %v1799_v26, %v1798_v23  ;;  %v1827_v49 = vadd.f32 %v1826_v60, %v1825_v31 }
 0x141   : > { %v1801_v33 = vsel %vm1791_vm7, %v1788_v47, 0.0  ;;  %v1818_v4 = vmul.f32 %v1788_v47, %v1788_v47  ;;  %1880 = vst.msk [vmem:[%s3136_s4 + $0x28] sm:$0xff] %vm1791_vm7, %v1788_v47  ;;  %v1834_v45 = vsel %vm1791_vm7, %v1820_v53, 0.0 }
 0x142   : > { %v1829_v43 = vadd.f32 %v1828_v16, %v1827_v49  ;;  %v1802_v51 = vadd.f32 %v1801_v33, %v1800_v19 }
 0x143   : > { %v1830_v28 = vsel %vm1791_vm7, %v1818_v4, 0.0 }
 0x144   : > { %v1804_v59 = vadd.f32 %v1803_v52, %v1802_v51  ;;  %v1831_v42 = vadd.f32 %v1830_v28, %v1829_v43 }
 0x146   : > { %v1806_v55 = vadd.f32 %v1805_v54, %v1804_v59  ;;  %v1833_v1 = vadd.f32 %v1832_v37, %v1831_v42 }
 0x148   : > { %v1807_v46 = vrot.slane %v1806_v55, 4  ;;  %v1835_v40 = vadd.f32 %v1834_v45, %v1833_v1 }
 0x14a   : > { %v1808_v41 = vadd.f32 %v1807_v46, %v1806_v55  ;;  %v1836_v57 = vrot.slane %v1835_v40, 4 }
 0x14c   : > { %v1809_v58 = vrot.slane %v1808_v41, 2  ;;  %v1837_v21 = vadd.f32 %v1836_v57, %v1835_v40 }
 0x14e   : > { %v1810_v61 = vadd.f32 %v1809_v58, %v1808_v41  ;;  %v1838_v62 = vrot.slane %v1837_v21, 2 }
 0x150   : > { %v1811_v0 = vrot.slane %v1810_v61, 1  ;;  %v1839_v10 = vadd.f32 %v1838_v62, %v1837_v21 }
 0x152   : > { %v1840_v50 = vrot.slane %v1839_v10, 1  ;;  %v1812_v11 = vadd.f32 %v1811_v0, %v1810_v61 }
 0x154   : > { %v1841_v12 = vadd.f32 %v1840_v50, %v1839_v10 }
 0x156   : > { %v1843_v22 = vsel %vm1842_vm8, %v1812_v11, %v1841_v12 }
 0x157   : > { %1853 = vrot.lane.b32.xlu1 %v1843_v22, %s2576_s5  ;;  %1845 = vrot.lane.b32.xlu0 %v1843_v22, %s2577_s6 }
 0x15b   : > { %1857 = vrot.lane.b32.xlu1 %v1843_v22, %s2578_s19  ;;  %1849 = vrot.lane.b32.xlu0 %v1843_v22, %s2579_s20 }
 0x15c   : > { %2497 = shalt.err (!%p2494_p3)
}
 0x15d   : > { %s2498_s29 = scalar_lea.hbm %s3182_s17, 1024  ;;  %s2502_s5 = scalar_lea.hbm %s3246_s2, 2048 }
 0x15e   : > { %p2499_p4 = scmp.ne.s32.totalorder %s3182_s17, %s2498_s29  ;;  %p2503_p9 = scmp.lt.s32.totalorder %s3182_s17, %s3246_s2 }
 0x15f   : > { %p2504_p10 = scmp.lt.s32.totalorder %s2502_s5, %s2498_s29 }
 0x160   : > { %p2500_p7 = pnand %p2499_p4, %p2645_p5 }
 0x161   : > { %p2505_p11 = por %p2504_p10, %p2503_p9 }
 0x162   : > { %p2501_p8 = pneg %p2500_p7 }
 0x164   : > { %p2506_p12 = pnand %p2505_p11, %p2501_p8 }
 0x166   : > { %2509 = shalt.err (!%p2506_p12)
}
 0x167   : > { %s2581_s10 = smov 128   ;;  %s2582_s11 = smov 8   ;;  %vm1873_vm9 = vcmask 58368  }
 0x168   : > { %2401 = dma.vmem_to_hbm [thread:$0]  (%p2645_p5), %s3184_s8, 1024, %s3182_s17, %s1884_s24, %s2581_s10, %s2581_s10, %s2582_s11  }
 0x169   : > { %s2583_s19 = smov 80   ;;  %s2584_s20 = smov 88  }
 0x16a   : > { %1865 = vrot.lane.b32.xlu1 %v1843_v22, %s2583_s19  ;;  %1861 = vrot.lane.b32.xlu0 %v1843_v22, %s2584_s20  ;;  %s2585_s25 = smov 72   ;;  %s2014_s26 = sshll.u32 %s3127_s9, 1 }
 0x16b   : > { %s2230_s8 = sshll.u32 %s2628_s16, 5  ;;  %s174_s17 = scalar_lea.vmem [#allocation4], %s2014_s26 }
 0x16c   : > { %s1918_s24 = sshll.u32 %s174_s17, 4  ;;  %s1916_s29 = scalar_lea.hbm %s3247_s3, %s2230_s8  ;;  %s1919_s24 = int_to_ptr.vmem [resolvable:$true] %s1918_s24 }
 0x16d   : > { %s1889_s30 = scalar_lea.sflag [#allocation5], %s3127_s9  ;;  %s2510_s4 = scalar_lea.vmem %s1919_s24, 32 }
 0x16e   : > { %1869 = vrot.lane.b32.xlu0 %v1843_v22, %s2585_s25  ;;  %p2511_p13 = scmp.ne.s32.totalorder %s1919_s24, %s2510_s4  ;;  %s2586_s5 = smov [#allocation4]  }
 0x16f   : > { %s2514_s16 = sshll.u32 %s2586_s5, 4  ;;  %s2515_s16 = int_to_ptr.vmem [resolvable:$false] %s2514_s16 }
 0x170   : > { %p2512_p0 = pnand %p2511_p13, %p2645_p5  ;;  %s2516_s6 = scalar_lea.vmem %s2515_s16, 64 }
 0x171   : > { %p2517_p2 = scmp.lt.s32.totalorder %s1919_s24, %s2515_s16  ;;  %p2518_p3 = scmp.lt.s32.totalorder %s2516_s6, %s2510_s4 }
 0x172   : > { %p2513_p1 = pneg %p2512_p0 }
 0x173   : > { %p2519_p4 = por %p2518_p3, %p2517_p2 }
 0x175   : > { %p2520_p7 = pnand %p2519_p4, %p2513_p1 }
 0x1c9   : > { %v1854_v17 = vpop.permute.xlu1 %1853  ;;  %v1846_v8 = vpop.permute.xlu0 %1845 }
 0x1ca   : > { %v1848_v20 = vadd.f32 %v1846_v8, %v1843_v22 }
 0x1cd   : > { %v1850_v56 = vpop.permute.xlu0 %1849  ;;  %v1858_v15 = vpop.permute.xlu1 %1857 }
 0x1ce   : > { %v1852_v6 = vadd.f32 %v1850_v56, %v1848_v20 }
 0x1d0   : > { %v1856_v27 = vadd.f32 %v1854_v17, %v1852_v6 }
 0x1d2   : > { %v1860_v30 = vadd.f32 %v1858_v15, %v1856_v27 }
 0x1dc   : > { %v1862_v5 = vpop.permute.xlu0 %1861  ;;  %v1866_v32 = vpop.permute.xlu1 %1865 }
 0x1dd   : > { %v1864_v2 = vadd.f32 %v1862_v5, %v1860_v30 }
 0x1df   : > { %v1868_v7 = vadd.f32 %v1866_v32, %v1864_v2 }
 0x1e0   : > { %v1870_v3 = vpop.permute.xlu0 %1869 }
 0x1e1   : > { %v1872_v13 = vadd.f32 %v1870_v3, %v1868_v7 }
 0x1e3   : > { %1874 = vst.msk [vmem:[%s174_s17] sm:$0x3] %vm1873_vm9, %v1872_v13 }
 0x1e4   : > { %2523 = shalt.err (!%p2520_p7)
}
 0x1e5   : > { %s2524_s7 = scalar_lea.hbm %s1916_s29, 32  ;;  %s2528_s11 = scalar_lea.hbm %s3247_s3, 64 }
 0x1e6   : > { %p2525_p8 = scmp.ne.s32.totalorder %s1916_s29, %s2524_s7  ;;  %p2529_p11 = scmp.lt.s32.totalorder %s1916_s29, %s3247_s3 }
 0x1e7   : > { %p2530_p12 = scmp.lt.s32.totalorder %s2528_s11, %s2524_s7 }
 0x1e8   : > { %p2526_p9 = pnand %p2525_p8, %p2645_p5 }
 0x1e9   : > { %p2531_p13 = por %p2530_p12, %p2529_p11 }
 0x1ea   : > { %p2527_p10 = pneg %p2526_p9 }
 0x1ec   : > { %p2532_p0 = pnand %p2531_p13, %p2527_p10 }
 0x1ee   : > { %2535 = shalt.err (!%p2532_p0)
}
 0x1ef   : > { %2402 = dma.vmem_to_hbm [thread:$0]  (%p2645_p5), %s1919_s24, 32, %s1916_s29, %s1889_s30  }
 0x1f0 PF: > { %p2412_p1 = scmp.ge.s32.totalorder %s2574_s15, 2  ;;  %s1930_s25 = sand.u32 1, %s2562_s12  }
 0x1f1   : > { %s1931_s26 = scalar_lea.sflag [#allocation3], %s1930_s25 }
 0x1f2   : > { %p2406_p2 = pnand %p2412_p1, %p2649_p6 }
 0x1f4   : > { %p2407_p3 = pneg %p2406_p2 }
 0x1f6   : > { %2553 = dma.done.wait (%p2407_p3), %s1931_s26, 1024  }
 0x1f7   : > { %2555 = vsyncadd (%p2407_p3), %s1931_s26, 4294966272  ;;  %s1940_s8 = scalar_lea.sflag [#allocation5], %s1930_s25 }
 0x1f8   : > { %2557 = dma.done.wait (%p2407_p3), %s1940_s8, 32  }
 0x1f9   : > { %2559 = vsyncadd (%p2407_p3), %s1940_s8, 4294967264  ;;  %p17_p5 = scmp.ge.s32.totalorder %s2632_s18, 4   ;;  %s3254_s12 = smov %s2566_s13 }
 0x1fa   : > { %s3255_s13 = smov %s2570_s14  ;;  %s3256_s14 = smov %s2643_s21 }
 0x1fb   : > { %s3257_s15 = smov %s2632_s18  ;;  %19 = sbr.rel (!%p17_p5) target bundleno = 5 (0x5), region = 90 }
 0x200   :  { %1945 = vsyncpa [#allocation3], 1 }
 0x201   :  { %1947 = vsyncpa [#allocation3 + $0x1], 1 }
 0x202   :  { %1948 = vsyncpa [#allocation5], 1 }
 0x203   :  { %1950 = vsyncpa [#allocation5 + $0x1], 1 }

</bundles_post_ra>
